<compile_context>
chip_gen: v7x
topology: tpu7x:2x2x1
jax: 0.10.0
libtpu: 0.0.40
codegen_flags: <defaults>
</compile_context>

<pallas_src>
import functools

import jax
import jax.numpy as jnp
from jax.experimental import pallas as pl
from jax.experimental.pallas import tpu as pltpu

PAD = 128  # lane-dense padded width for all narrow feature dims


def gnn_encoder_kernel(xc_ref, a_ref, w1_ref, b1_ref, w2_ref, b2_ref,
                       wfc_ref, bfc_ref, out_ref, *, slope):
    f32 = jnp.float32
    bf16 = jnp.bfloat16
    n, tb, pad = xc_ref.shape
    m = n * tb

    a = a_ref[...]                        # [N, N]   f32, VMEM-resident adjacency
    xc2d = xc_ref[...].reshape(m, pad)    # [M, PAD] bf16 lane-packed input
                                          #   lanes [2H,2H+F): origin features
                                          #   lanes [2H+F,2H+F+2): [rej, theta]

    def leaky(t):
        return jnp.where(t > 0, t, slope * t)

    def gcn(h2d_bf16, w_ref, b_ref):
        # Weight side: ONE (M,128)@(128,128) MXU matmul, f32 accumulation.
        hw = jnp.dot(h2d_bf16, w_ref[...], preferred_element_type=f32)    # [M, PAD]
        # Adjacency side: ONE (N,N)@(N, tb*PAD) matmul covering all batches.
        agg = jnp.dot(a, hw.reshape(n, tb * pad), preferred_element_type=f32)
        return leaky(agg.reshape(m, pad) + b_ref[...])                    # bias [1, PAD]

    # GCNConv 1 (W1 rows live at [2H, 2H+F) to match the packed x lanes).
    h1 = gcn(xc2d, w1_ref, b1_ref)                 # nonzero lanes: [0, H)
    # GCNConv 2.
    h2 = gcn(h1.astype(bf16), w2_ref, b2_ref)      # nonzero lanes: [0, 2H)

    # concat([conv2, origin_graph, globals]) == disjoint-lane add:
    # h2 occupies lanes [0,2H) and is exactly zero elsewhere; xc2d is zero on
    # [0,2H) and carries x / globals on [2H, 2H+F+2).  Then ONE fc matmul.
    cat = h2.astype(bf16) + xc2d
    o = jnp.dot(cat, wfc_ref[...], preferred_element_type=f32) + bfc_ref[...]
    out_ref[...] = jnp.tanh(o).reshape(n, tb, pad).astype(out_ref.dtype)


def build_norm_adj(edge_index, num_nodes):
    """Dense D^-1/2 (A + I) D^-1/2 (GCNConv normalization), f32 [N, N]."""
    src = edge_index[0]
    dst = edge_index[1]
    adj = jnp.zeros((num_nodes, num_nodes), jnp.float32)
    adj = adj.at[dst, src].set(1.0)                                   # src -> dst messages
    adj = jnp.maximum(adj, jnp.eye(num_nodes, dtype=jnp.float32))     # add self loops
    deg = jnp.sum(adj, axis=1)
    d_inv_sqrt = jax.lax.rsqrt(jnp.maximum(deg, 1e-12))
    return d_inv_sqrt[:, None] * adj * d_inv_sqrt[None, :]


def init_gnn_params(key, num_features, hidden_dim, out_per_area):
    """Xavier-uniform weights, zero biases; [in, out] layout.

    Gain matches PyTorch's nn.init.calculate_gain('leaky_relu') default
    (negative_slope=0.01), exactly as the original module's _init_weights.
    """
    gain = (2.0 / (1.0 + 0.01 ** 2)) ** 0.5

    def xavier(k, fan_in, fan_out):
        bound = gain * (6.0 / (fan_in + fan_out)) ** 0.5
        return jax.random.uniform(k, (fan_in, fan_out), minval=-bound,
                                  maxval=bound, dtype=jnp.float32)

    h2 = hidden_dim * 2
    fc_in = h2 + num_features + 2
    k1, k2, k3 = jax.random.split(key, 3)
    return {
        "w1": xavier(k1, num_features, hidden_dim),
        "b1": jnp.zeros((hidden_dim,), jnp.float32),
        "w2": xavier(k2, hidden_dim, h2),
        "b2": jnp.zeros((h2,), jnp.float32),
        "wfc": xavier(k3, fc_in, out_per_area),   # rows ordered [conv2 | x | globals]
        "bfc": jnp.zeros((out_per_area,), jnp.float32),
    }


def pack_params(params, num_features, hidden_dim):
    """Pad every feature dim to PAD lanes; weights -> bf16, biases -> f32 [1,PAD].

    W1's rows are shifted to [2H, 2H+F) so that the lane-packed concat input
    (x at lanes [2H, 2H+F), globals at [2H+F, 2H+F+2)) feeds layer 1 and the
    fused fc with a single weight layout.
    """
    h2 = hidden_dim * 2

    def pad_w(w, row_off=0):
        out = jnp.zeros((PAD, PAD), jnp.float32)
        out = out.at[row_off:row_off + w.shape[0], :w.shape[1]].set(w)
        return out.astype(jnp.bfloat16)

    def pad_b(b):
        return jnp.zeros((1, PAD), jnp.float32).at[0, :b.shape[0]].set(b)

    return {
        "w1": pad_w(params["w1"], row_off=h2),   # x features live at lanes [2H, 2H+F)
        "b1": pad_b(params["b1"]),
        "w2": pad_w(params["w2"], row_off=0),
        "b2": pad_b(params["b2"]),
        "wfc": pad_w(params["wfc"], row_off=0),  # rows already [conv2 | x | globals]
        "bfc": pad_b(params["bfc"]),
    }


def gnn_encoder_forward(state, edge_index, rej_rate, theta_value, packed, *,
                        batch_size, num_area, num_features, hidden_dim,
                        out_per_area, batch_tile=None):
    B, N, F = batch_size, num_area, num_features
    H2 = 2 * hidden_dim

    # --- host-side preprocessing (plain JAX) --------------------------------
    x = state.reshape(B, N, F).astype(jnp.float32)
    rej = jnp.ravel(rej_rate).astype(jnp.float32)
    theta = jnp.ravel(theta_value).astype(jnp.float32)

    # Lane-packed concat input: zeros on [0, 2H) (reserved for conv2 output),
    # original features on [2H, 2H+F), globals on [2H+F, 2H+F+2).
    xc = jnp.zeros((B, N, PAD), jnp.float32)
    xc = xc.at[:, :, H2:H2 + F].set(x)
    xc = xc.at[:, :, H2 + F].set(rej[:, None])
    xc = xc.at[:, :, H2 + F + 1].set(theta[:, None])
    # Kernel layout is [N, B, PAD] so the adjacency step is a single matmul;
    # pass in bf16 (halves HBM->VMEM traffic, f32 accumulation unchanged).
    xc = jnp.transpose(xc, (1, 0, 2)).astype(jnp.bfloat16)            # [N, B, PAD]

    a_norm = build_norm_adj(edge_index, N)                            # [N, N] f32

    # --- batch tiling: grid=(1,) by default (single-TC v5e/v6e); batch_tile
    # can shard the "parallel" batch axis across v7x's two TensorCores. -------
    tb = B if batch_tile is None else int(batch_tile)
    if tb <= 0 or B % tb != 0 or (tb != B and tb % 8 != 0):
        tb = B
    grid = (B // tb,)

    operands = (xc, a_norm, packed["w1"], packed["b1"], packed["w2"],
                packed["b2"], packed["wfc"], packed["bfc"])

    # --- advisory cost estimate + VMEM budget from the real footprint -------
    M = B * N
    flops = 3 * 2 * M * PAD * PAD + 2 * 2 * N * N * B * PAD
    transcendentals = M * PAD                                          # tanh
    io_bytes = sum(int(o.size) * o.dtype.itemsize for o in operands)
    io_bytes += N * B * PAD * 4                                        # output
    vmem_limit = int(min(32 * 1024 * 1024, max(4 * 1024 * 1024, 4 * io_bytes)))

    out_padded = pl.pallas_call(
        functools.partial(gnn_encoder_kernel, slope=0.1),
        out_shape=jax.ShapeDtypeStruct((N, B, PAD), jnp.float32),
        grid=grid,
        in_specs=[
            pl.BlockSpec((N, tb, PAD), lambda i: (0, i, 0)),   # lane-packed input
            pl.BlockSpec((N, N), lambda i: (0, 0)),            # normalized adjacency
            pl.BlockSpec((PAD, PAD), lambda i: (0, 0)),         # w1 (rows at 2H..2H+F)
            pl.BlockSpec((1, PAD), lambda i: (0, 0)),           # b1
            pl.BlockSpec((PAD, PAD), lambda i: (0, 0)),         # w2
            pl.BlockSpec((1, PAD), lambda i: (0, 0)),           # b2
            pl.BlockSpec((PAD, PAD), lambda i: (0, 0)),         # fused fc weight
            pl.BlockSpec((1, PAD), lambda i: (0, 0)),           # fc bias
        ],
        out_specs=pl.BlockSpec((N, tb, PAD), lambda i: (0, i, 0)),
        compiler_params=pltpu.CompilerParams(
            dimension_semantics=("parallel",),
            vmem_limit_bytes=vmem_limit),
        cost_estimate=pl.CostEstimate(flops=flops,
                                      transcendentals=transcendentals,
                                      bytes_accessed=io_bytes),
    )(*operands)

    # [N, B, PAD] -> [B, N, out_per_area] -> flatten, exactly like
    # `x = self.fc(x); x.view(batch_size, -1)`.
    out = jnp.transpose(out_padded, (1, 0, 2))[:, :, :out_per_area]
    return out.reshape(B, N * out_per_area)


def gnn_encoder_reference(state, edge_index, rej_rate, theta_value, params, *,
                          batch_size, num_area, num_features, out_per_area):
    """Pure-JAX reference with the same bf16-weight / f32-accumulate discipline."""
    f32, bf16 = jnp.float32, jnp.bfloat16
    B, N, F = batch_size, num_area, num_features
    x0 = state.reshape(B, N, F).astype(f32)
    a = build_norm_adj(edge_index, N)                        # f32 adjacency

    def leaky(t):
        return jnp.where(t > 0, t, 0.1 * t)

    def gcn(x, w, b):
        xw = jnp.einsum('bnf,fh->bnh', x.astype(bf16), w.astype(bf16),
                        preferred_element_type=f32)
        agg = jnp.einsum('nm,bmh->bnh', a, xw, preferred_element_type=f32)
        return agg + b

    h1 = leaky(gcn(x0, params["w1"], params["b1"]))
    h2 = leaky(gcn(h1, params["w2"], params["b2"]))

    rej = jnp.ravel(rej_rate).astype(f32)
    theta = jnp.ravel(theta_value).astype(f32)
    g = jnp.stack([rej, theta], axis=1)                      # [B, 2]
    g = jnp.broadcast_to(g[:, None, :], (B, N, 2))

    cat = jnp.concatenate([h2, x0, g], axis=2)               # [B, N, 2H+F+2]
    out = jnp.einsum('bnc,co->bno', cat.astype(bf16),
                     params["wfc"].astype(bf16),
                     preferred_element_type=f32) + params["bfc"]
    return jnp.tanh(out).reshape(B, N * out_per_area)


if __name__ == "__main__":
    key = jax.random.PRNGKey(0)
    k_par, k_state, k_rej, k_theta = jax.random.split(key, 4)

    # Constants implied by the module (NUM_FEATURES / NUM_AREA are module-level
    # knobs in the original file; chosen small, with output_dim % NUM_AREA == 0).
    NUM_FEATURES = 4
    NUM_AREA = 16
    HIDDEN_DIM = 8
    OUTPUT_DIM = 256
    OUT_PER_AREA = OUTPUT_DIM // NUM_AREA
    BATCH = 8

    params = init_gnn_params(k_par, NUM_FEATURES, HIDDEN_DIM, OUT_PER_AREA)
    packed = pack_params(params, NUM_FEATURES, HIDDEN_DIM)

    # Undirected ring graph over NUM_AREA nodes (both edge directions).
    src = jnp.arange(NUM_AREA, dtype=jnp.int32)
    dst = (src + 1) % NUM_AREA
    edge_index = jnp.stack([jnp.concatenate([src, dst]),
                            jnp.concatenate([dst, src])], axis=0)

    state = jax.random.normal(k_state, (BATCH, NUM_AREA * NUM_FEATURES),
                              dtype=jnp.float32)
    rej_rate = jax.random.uniform(k_rej, (BATCH, 1), dtype=jnp.float32)
    theta_value = jax.random.uniform(k_theta, (BATCH, 1), dtype=jnp.float32)

    out = gnn_encoder_forward(state, edge_index, rej_rate, theta_value, packed,
                              batch_size=BATCH, num_area=NUM_AREA,
                              num_features=NUM_FEATURES, hidden_dim=HIDDEN_DIM,
                              out_per_area=OUT_PER_AREA)
    out = jax.block_until_ready(out)

    ref = gnn_encoder_reference(state, edge_index, rej_rate, theta_value, params,
                                batch_size=BATCH, num_area=NUM_AREA,
                                num_features=NUM_FEATURES,
                                out_per_area=OUT_PER_AREA)

    assert out.shape == (BATCH, OUTPUT_DIM), out.shape
    err = float(jnp.max(jnp.abs(out - ref)))
    assert err < 2e-2, f"max abs diff vs reference: {err}"
    print("KERNEL_OK")
</pallas_src>

<mosaic_0001>
module attributes {stable_mosaic.version = 11 : i64} {
  func.func @gnn_encoder_kernel(%arg0: i32, %arg1: memref<16x8x128xbf16, #tpu.memory_space<vmem>>, %arg2: memref<16x16xf32, #tpu.memory_space<vmem>>, %arg3: memref<128x128xbf16, #tpu.memory_space<vmem>>, %arg4: memref<1x128xf32, #tpu.memory_space<vmem>>, %arg5: memref<128x128xbf16, #tpu.memory_space<vmem>>, %arg6: memref<1x128xf32, #tpu.memory_space<vmem>>, %arg7: memref<128x128xbf16, #tpu.memory_space<vmem>>, %arg8: memref<1x128xf32, #tpu.memory_space<vmem>>, %arg9: memref<16x8x128xf32, #tpu.memory_space<vmem>>) attributes {dimension_semantics = [#tpu.dimension_semantics<parallel>], iteration_bounds = array<i64: 1>, scalar_prefetch = 0 : i64, scratch_operands = 0 : i64, tpu.core_type = #tpu.core_type<tc>, window_params = [{transform_indices = @transform_0, window_bounds = array<i64: 16, 8, 128>}, {pipeline_mode = #tpu.pipeline_mode<synchronous>, transform_indices = @transform_1, window_bounds = array<i64: 16, 16>}, {pipeline_mode = #tpu.pipeline_mode<synchronous>, transform_indices = @transform_2, window_bounds = array<i64: 128, 128>}, {pipeline_mode = #tpu.pipeline_mode<synchronous>, transform_indices = @transform_3, window_bounds = array<i64: 1, 128>}, {pipeline_mode = #tpu.pipeline_mode<synchronous>, transform_indices = @transform_4, window_bounds = array<i64: 128, 128>}, {pipeline_mode = #tpu.pipeline_mode<synchronous>, transform_indices = @transform_5, window_bounds = array<i64: 1, 128>}, {pipeline_mode = #tpu.pipeline_mode<synchronous>, transform_indices = @transform_6, window_bounds = array<i64: 128, 128>}, {pipeline_mode = #tpu.pipeline_mode<synchronous>, transform_indices = @transform_7, window_bounds = array<i64: 1, 128>}, {transform_indices = @transform_8, window_bounds = array<i64: 16, 8, 128>}]} {
    %c0 = arith.constant 0 : index
    %c0_0 = arith.constant 0 : index
    %0 = vector.load %arg2[%c0, %c0_0] : memref<16x16xf32, #tpu.memory_space<vmem>>, vector<16x16xf32>
    %c0_1 = arith.constant 0 : index
    %c0_2 = arith.constant 0 : index
    %c0_3 = arith.constant 0 : index
    %1 = vector.load %arg1[%c0_1, %c0_2, %c0_3] : memref<16x8x128xbf16, #tpu.memory_space<vmem>>, vector<16x8x128xbf16>
    %2 = vector.shape_cast %1 : vector<16x8x128xbf16> to vector<128x128xbf16>
    %c0_4 = arith.constant 0 : index
    %c0_5 = arith.constant 0 : index
    %3 = vector.load %arg3[%c0_4, %c0_5] : memref<128x128xbf16, #tpu.memory_space<vmem>>, vector<128x128xbf16>
    %cst = arith.constant dense<0.000000e+00> : vector<128x128xf32>
    %4 = tpu.matmul %2, %3, %cst {dimension_numbers = #tpu.dot_dimension_numbers<[1], [0], [0], [1], [0, 0, 1, 1], [], []>} : vector<128x128xbf16>, vector<128x128xbf16>, vector<128x128xf32> -> vector<128x128xf32>
    %5 = vector.shape_cast %4 : vector<128x128xf32> to vector<16x1024xf32>
    %cst_6 = arith.constant dense<0.000000e+00> : vector<16x1024xf32>
    %6 = tpu.matmul %0, %5, %cst_6 {dimension_numbers = #tpu.dot_dimension_numbers<[1], [0], [0], [1], [0, 0, 1, 1], [], []>} : vector<16x16xf32>, vector<16x1024xf32>, vector<16x1024xf32> -> vector<16x1024xf32>
    %7 = vector.shape_cast %6 : vector<16x1024xf32> to vector<128x128xf32>
    %c0_7 = arith.constant 0 : index
    %c0_8 = arith.constant 0 : index
    %8 = vector.load %arg4[%c0_7, %c0_8] : memref<1x128xf32, #tpu.memory_space<vmem>>, vector<1x128xf32>
    %9 = vector.broadcast %8 : vector<1x128xf32> to vector<128x128xf32>
    %10 = arith.addf %7, %9 : vector<128x128xf32>
    %cst_9 = arith.constant 0.000000e+00 : f32
    %11 = vector.broadcast %cst_9 : f32 to vector<128x128xf32>
    %12 = arith.cmpf ogt, %10, %11 : vector<128x128xf32>
    %cst_10 = arith.constant 1.000000e-01 : f32
    %13 = vector.broadcast %cst_10 : f32 to vector<128x128xf32>
    %14 = arith.mulf %13, %10 : vector<128x128xf32>
    %15 = arith.select %12, %10, %14 : vector<128x128xi1>, vector<128x128xf32>
    %16 = arith.truncf %15 : vector<128x128xf32> to vector<128x128xbf16>
    %c0_11 = arith.constant 0 : index
    %c0_12 = arith.constant 0 : index
    %17 = vector.load %arg5[%c0_11, %c0_12] : memref<128x128xbf16, #tpu.memory_space<vmem>>, vector<128x128xbf16>
    %cst_13 = arith.constant dense<0.000000e+00> : vector<128x128xf32>
    %18 = tpu.matmul %16, %17, %cst_13 {dimension_numbers = #tpu.dot_dimension_numbers<[1], [0], [0], [1], [0, 0, 1, 1], [], []>} : vector<128x128xbf16>, vector<128x128xbf16>, vector<128x128xf32> -> vector<128x128xf32>
    %19 = vector.shape_cast %18 : vector<128x128xf32> to vector<16x1024xf32>
    %cst_14 = arith.constant dense<0.000000e+00> : vector<16x1024xf32>
    %20 = tpu.matmul %0, %19, %cst_14 {dimension_numbers = #tpu.dot_dimension_numbers<[1], [0], [0], [1], [0, 0, 1, 1], [], []>} : vector<16x16xf32>, vector<16x1024xf32>, vector<16x1024xf32> -> vector<16x1024xf32>
    %21 = vector.shape_cast %20 : vector<16x1024xf32> to vector<128x128xf32>
    %c0_15 = arith.constant 0 : index
    %c0_16 = arith.constant 0 : index
    %22 = vector.load %arg6[%c0_15, %c0_16] : memref<1x128xf32, #tpu.memory_space<vmem>>, vector<1x128xf32>
    %23 = vector.broadcast %22 : vector<1x128xf32> to vector<128x128xf32>
    %24 = arith.addf %21, %23 : vector<128x128xf32>
    %cst_17 = arith.constant 0.000000e+00 : f32
    %25 = vector.broadcast %cst_17 : f32 to vector<128x128xf32>
    %26 = arith.cmpf ogt, %24, %25 : vector<128x128xf32>
    %cst_18 = arith.constant 1.000000e-01 : f32
    %27 = vector.broadcast %cst_18 : f32 to vector<128x128xf32>
    %28 = arith.mulf %27, %24 : vector<128x128xf32>
    %29 = arith.select %26, %24, %28 : vector<128x128xi1>, vector<128x128xf32>
    %30 = arith.truncf %29 : vector<128x128xf32> to vector<128x128xbf16>
    %31 = arith.addf %30, %2 : vector<128x128xbf16>
    %c0_19 = arith.constant 0 : index
    %c0_20 = arith.constant 0 : index
    %32 = vector.load %arg7[%c0_19, %c0_20] : memref<128x128xbf16, #tpu.memory_space<vmem>>, vector<128x128xbf16>
    %cst_21 = arith.constant dense<0.000000e+00> : vector<128x128xf32>
    %33 = tpu.matmul %31, %32, %cst_21 {dimension_numbers = #tpu.dot_dimension_numbers<[1], [0], [0], [1], [0, 0, 1, 1], [], []>} : vector<128x128xbf16>, vector<128x128xbf16>, vector<128x128xf32> -> vector<128x128xf32>
    %c0_22 = arith.constant 0 : index
    %c0_23 = arith.constant 0 : index
    %34 = vector.load %arg8[%c0_22, %c0_23] : memref<1x128xf32, #tpu.memory_space<vmem>>, vector<1x128xf32>
    %35 = vector.broadcast %34 : vector<1x128xf32> to vector<128x128xf32>
    %36 = arith.addf %33, %35 : vector<128x128xf32>
    %37 = math.tanh %36 : vector<128x128xf32>
    %38 = vector.shape_cast %37 : vector<128x128xf32> to vector<16x8x128xf32>
    %c0_24 = arith.constant 0 : index
    %c0_25 = arith.constant 0 : index
    %c0_26 = arith.constant 0 : index
    %39 = vector.load %arg9[%c0_24, %c0_25, %c0_26] : memref<16x8x128xf32, #tpu.memory_space<vmem>>, vector<16x8x128xf32>
    tpu.vector_store %arg9[%c0_24, %c0_25, %c0_26], %38 {strides = array<i32>} : memref<16x8x128xf32, #tpu.memory_space<vmem>>, vector<16x8x128xf32>,
    return
  }
  func.func @transform_0(%arg0: i32) -> (i32, i32, i32) {
    %c0_i32 = arith.constant 0 : i32
    %c0_i32_0 = arith.constant 0 : i32
    %c0_i32_1 = arith.constant 0 : i32
    return %c0_i32, %arg0, %c0_i32_0 : i32, i32, i32
  }
  func.func @transform_1(%arg0: i32) -> (i32, i32) {
    %c0_i32 = arith.constant 0 : i32
    %c0_i32_0 = arith.constant 0 : i32
    %c0_i32_1 = arith.constant 0 : i32
    return %c0_i32, %c0_i32_0 : i32, i32
  }
  func.func @transform_2(%arg0: i32) -> (i32, i32) {
    %c0_i32 = arith.constant 0 : i32
    %c0_i32_0 = arith.constant 0 : i32
    %c0_i32_1 = arith.constant 0 : i32
    return %c0_i32, %c0_i32_0 : i32, i32
  }
  func.func @transform_3(%arg0: i32) -> (i32, i32) {
    %c0_i32 = arith.constant 0 : i32
    %c0_i32_0 = arith.constant 0 : i32
    %c0_i32_1 = arith.constant 0 : i32
    return %c0_i32, %c0_i32_0 : i32, i32
  }
  func.func @transform_4(%arg0: i32) -> (i32, i32) {
    %c0_i32 = arith.constant 0 : i32
    %c0_i32_0 = arith.constant 0 : i32
    %c0_i32_1 = arith.constant 0 : i32
    return %c0_i32, %c0_i32_0 : i32, i32
  }
  func.func @transform_5(%arg0: i32) -> (i32, i32) {
    %c0_i32 = arith.constant 0 : i32
    %c0_i32_0 = arith.constant 0 : i32
    %c0_i32_1 = arith.constant 0 : i32
    return %c0_i32, %c0_i32_0 : i32, i32
  }
  func.func @transform_6(%arg0: i32) -> (i32, i32) {
    %c0_i32 = arith.constant 0 : i32
    %c0_i32_0 = arith.constant 0 : i32
    %c0_i32_1 = arith.constant 0 : i32
    return %c0_i32, %c0_i32_0 : i32, i32
  }
  func.func @transform_7(%arg0: i32) -> (i32, i32) {
    %c0_i32 = arith.constant 0 : i32
    %c0_i32_0 = arith.constant 0 : i32
    %c0_i32_1 = arith.constant 0 : i32
    return %c0_i32, %c0_i32_0 : i32, i32
  }
  func.func @transform_8(%arg0: i32) -> (i32, i32, i32) {
    %c0_i32 = arith.constant 0 : i32
    %c0_i32_0 = arith.constant 0 : i32
    %c0_i32_1 = arith.constant 0 : i32
    return %c0_i32, %arg0, %c0_i32_0 : i32, i32, i32
  }
}

</mosaic_0001>

<bundles_post_ra>
// kernel: tpu_custom_call.1
= control target key start
LH: loop header
LB: loop body
LE: loop exit
PB: predicated region body
PF: predicated region fallthrough
CT: control target
= control target key end

     0   :  { %13 = vsyncpa [#allocation3], 0  ;;  %s3628_s0 = inlined_call_operand.hbm [shape: bf16[16,8,128], index: 0, kind: input, shape index: {}]   ;;  %s3629_s1 = inlined_call_operand.hbm [shape: f32[16,16], index: 1, kind: input, shape index: {}]   ;;  %s3630_s2 = inlined_call_operand.hbm [shape: bf16[128,128], index: 2, kind: input, shape index: {}]   ;;  %s3631_s3 = inlined_call_operand.vmem [shape: f32[1,128], index: 3, kind: input, shape index: {}]   ;;  %s3632_s4 = inlined_call_operand.hbm [shape: bf16[128,128], index: 4, kind: input, shape index: {}]   ;;  %s3633_s5 = inlined_call_operand.vmem [shape: f32[1,128], index: 5, kind: input, shape index: {}]   ;;  %s3634_s6 = inlined_call_operand.hbm [shape: bf16[128,128], index: 6, kind: input, shape index: {}]   ;;  %s3635_s7 = inlined_call_operand.vmem [shape: f32[1,128], index: 7, kind: input, shape index: {}]   ;;  %s3636_s8 = inlined_call_operand.hbm [shape: f32[16,8,128], index: 8, kind: output, shape index: {}]  }
   0x1   :  { %14 = vsyncpa [#allocation6], 0 }
   0x2   :  { %15 = vsyncpa [#allocation9], 0 }
   0x3   :  { %16 = vsyncpa [#allocation4], 0  ;;  %s3162_s27 = smov [#allocation5]   ;;  %s3022_s9 = scalar_lea.hbm %s3629_s1, 256 }
   0x4   :  { %s34_s28 = sshll.u32 %s3162_s27, 4  ;;  %p3023_p0 = scmp.ne.s32.totalorder %s3629_s1, %s3022_s9  ;;  %s35_s28 = int_to_ptr.vmem [resolvable:$true] %s34_s28 }
   0x5   :  { %p3026_p1 = scmp.lt.u32.totalorder %s3022_s9, %s3629_s1 }
   0x7   :  { %p3028_p2 = pnand %p3026_p1, %p3023_p0 }
   0x9   :  { %3031 = shalt.err (!%p3028_p2)
}
   0xa   :  { %s3032_s14 = scalar_lea.vmem %s35_s28, 256  ;;  %p3037_p4 = scmp.lt.s32.totalorder %s35_s28, %s35_s28 }
   0xb   :  { %p3033_p3 = scmp.ne.s32.totalorder %s35_s28, %s3032_s14  ;;  %p3038_p5 = scmp.lt.s32.totalorder %s3032_s14, %s3032_s14 }
   0xd   :  { %p3039_p6 = por %p3038_p5, %p3037_p4 }
   0xf   :  { %p3040_p7 = pnand %p3039_p6, %p3033_p3 }
  0x11   :  { %3043 = shalt.err (!%p3040_p7)
}
  0x12   :  { %s3163_s15 = smov 128   ;;  %s3164_s16 = smov 8  }
  0x13   :  { %40 = dma.hbm_to_vmem [thread:$0]  %s3629_s1, 256, %s35_s28, [#allocation6], %s3163_s15, %s3163_s15, %s3164_s16  }
  0x14   :  { %s3165_s19 = smov [#allocation8]   ;;  %s3166_s21 = smov [#allocation2]  }
  0x15   :  { %s60_s20 = sshll.u32 %s3165_s19, 4  ;;  %s22_s22 = sshll.u32 %s3166_s21, 4  ;;  %s61_s20 = int_to_ptr.vmem [resolvable:$true] %s60_s20  ;;  %s23_s22 = int_to_ptr.vmem [resolvable:$true] %s22_s22 }
  0x16   :  { %s3044_s25 = scalar_lea.hbm %s3632_s4, 1024 }
  0x17   :  { %p3045_p8 = scmp.ne.s32.totalorder %s3632_s4, %s3044_s25  ;;  %p3048_p9 = scmp.lt.u32.totalorder %s3044_s25, %s3632_s4 }
  0x19   :  { %p3050_p10 = pnand %p3048_p9, %p3045_p8 }
  0x1b   :  { %3053 = shalt.err (!%p3050_p10)
}
  0x1c   :  { %s3054_s1 = scalar_lea.vmem %s61_s20, 1024  ;;  %p3059_p12 = scmp.lt.s32.totalorder %s61_s20, %s61_s20 }
  0x1d   :  { %p3055_p11 = scmp.ne.s32.totalorder %s61_s20, %s3054_s1  ;;  %p3060_p13 = scmp.lt.s32.totalorder %s3054_s1, %s3054_s1 }
  0x1f   :  { %p3061_p0 = por %p3060_p13, %p3059_p12 }
  0x21   :  { %p3062_p1 = pnand %p3061_p0, %p3055_p11 }
  0x23   :  { %3065 = shalt.err (!%p3062_p1)
}
  0x24   :  { %s3167_s28 = smov 64   ;;  %s3168_s9 = smov 4  }
  0x25   :  { %66 = dma.hbm_to_vmem [thread:$0]  %s3632_s4, 1024, %s61_s20, [#allocation9], %s3167_s28, %s3167_s28, %s3168_s9  }
  0x26   :  { %s3066_s14 = scalar_lea.hbm %s3628_s0, 1024 }
  0x27   :  { %p3067_p2 = scmp.ne.s32.totalorder %s3628_s0, %s3066_s14  ;;  %p3070_p3 = scmp.lt.u32.totalorder %s3066_s14, %s3628_s0 }
  0x29   :  { %p3072_p4 = pnand %p3070_p3, %p3067_p2 }
  0x2b   :  { %3075 = shalt.err (!%p3072_p4)
}
  0x2c   :  { %s3076_s23 = scalar_lea.vmem %s23_s22, 1024  ;;  %p3081_p6 = scmp.lt.s32.totalorder %s23_s22, %s23_s22 }
  0x2d   :  { %p3077_p5 = scmp.ne.s32.totalorder %s23_s22, %s3076_s23  ;;  %p3082_p7 = scmp.lt.s32.totalorder %s3076_s23, %s3076_s23 }
  0x2f   :  { %p3083_p8 = por %p3082_p7, %p3081_p6 }
  0x31   :  { %p3084_p9 = pnand %p3083_p8, %p3077_p5 }
  0x33   :  { %3087 = shalt.err (!%p3084_p9)
}
  0x34   :  { %28 = dma.hbm_to_vmem [thread:$0]  %s3628_s0, 1024, %s23_s22, [#allocation3], %s3167_s28, %s3167_s28, %s3168_s9  }
  0x35   :  { %s3169_s24 = smov [#allocation7]   ;;  %s3170_s26 = smov [#allocation10]  }
  0x36   :  { %s46_s25 = sshll.u32 %s3169_s24, 4  ;;  %s74_s27 = sshll.u32 %s3170_s26, 4  ;;  %s47_s25 = int_to_ptr.vmem [resolvable:$true] %s46_s25  ;;  %s75_s27 = int_to_ptr.vmem [resolvable:$true] %s74_s27 }
  0x37   :  { %s3088_s1 = scalar_lea.hbm %s3630_s2, 1024 }
  0x38   :  { %p3089_p10 = scmp.ne.s32.totalorder %s3630_s2, %s3088_s1  ;;  %p3092_p11 = scmp.lt.u32.totalorder %s3088_s1, %s3630_s2 }
  0x3a   :  { %p3094_p12 = pnand %p3092_p11, %p3089_p10 }
  0x3c   :  { %3097 = shalt.err (!%p3094_p12)
}
  0x3d   :  { %s3098_s0 = scalar_lea.vmem %s47_s25, 1024  ;;  %p3103_p0 = scmp.lt.s32.totalorder %s47_s25, %s47_s25 }
  0x3e   :  { %p3099_p13 = scmp.ne.s32.totalorder %s47_s25, %s3098_s0  ;;  %p3104_p1 = scmp.lt.s32.totalorder %s3098_s0, %s3098_s0 }
  0x40   :  { %p3105_p2 = por %p3104_p1, %p3103_p0 }
  0x42   :  { %p3106_p3 = pnand %p3105_p2, %p3099_p13 }
  0x44   :  { %3109 = shalt.err (!%p3106_p3)
}
  0x45   :  { %52 = dma.hbm_to_vmem [thread:$0]  %s3630_s2, 1024, %s47_s25, [#allocation6], %s3167_s28, %s3167_s28, %s3168_s9  }
  0x46   :  { %s3110_s19 = scalar_lea.hbm %s3634_s6, 1024 }
  0x47   :  { %p3111_p4 = scmp.ne.s32.totalorder %s3634_s6, %s3110_s19  ;;  %p3114_p5 = scmp.lt.u32.totalorder %s3110_s19, %s3634_s6 }
  0x49   :  { %p3116_p6 = pnand %p3114_p5, %p3111_p4 }
  0x4b   :  { %3119 = shalt.err (!%p3116_p6)
}
  0x4c   :  { %s3120_s24 = scalar_lea.vmem %s75_s27, 1024  ;;  %p3125_p8 = scmp.lt.s32.totalorder %s75_s27, %s75_s27 }
  0x4d   :  { %p3121_p7 = scmp.ne.s32.totalorder %s75_s27, %s3120_s24  ;;  %p3126_p9 = scmp.lt.s32.totalorder %s3120_s24, %s3120_s24 }
  0x4f   :  { %p3127_p10 = por %p3126_p9, %p3125_p8 }
  0x51   :  { %p3128_p11 = pnand %p3127_p10, %p3121_p7 }
  0x53   :  { %3131 = shalt.err (!%p3128_p11)
}
  0x54   :  { %80 = dma.hbm_to_vmem [thread:$0]  %s3634_s6, 1024, %s75_s27, [#allocation9], %s3167_s28, %s3167_s28, %s3168_s9  }
  0x55   :  { %3154 = dma.done.wait [#allocation3], 1024  }
  0x56   :  { %3155 = vsyncadd [#allocation3], 4294966272 }
  0x57   :  { %3156 = dma.done.wait [#allocation6], 1280  }
  0x58   :  { %3157 = vsyncadd [#allocation6], 4294966016 }
  0x59   :  { %3158 = dma.done.wait [#allocation9], 2048  }
  0x5a   :  { %3159 = vsyncadd [#allocation9], 4294965248  ;;  %v2950_v0 = vld [vmem:[#allocation7] sm:$0xff]   ;;  %v2951_v1 = vld [vmem:[#allocation7 + $0x8] sm:$0xff]   ;;  %v3171_v16 = vmov 0.0   ;;  %v353_v19 = vlaneseq  ;;  %vm630_vm0 = vcmask 130048  }
  0x5b   :  { %2810 = vmatprep.subr.bf16.mxu0 %v2950_v0  ;;  %v2952_v2 = vld [vmem:[#allocation7 + $0x10] sm:$0xff]   ;;  %v2953_v3 = vld [vmem:[#allocation7 + $0x18] sm:$0xff]   ;;  %v2954_v5 = vld [vmem:[#allocation7 + $0x20] sm:$0xff]   ;;  %855 = vmatprep.mubr.f32.mxu1 %v3171_v16  ;;  %v3172_v17 = vmov 1966171168  }
  0x5c   :  { %2811 = vmatpush3.bf16.msra.mxu0 %v2950_v0  ;;  %v2958_v4 = vld [vmem:[#allocation2] sm:$0xff]   ;;  %v2955_v6 = vld [vmem:[#allocation7 + $0x28] sm:$0xff]   ;;  %v2957_v8 = vld [vmem:[#allocation7 + $0x38] sm:$0xff]   ;;  %v351_v18 = vunpack.c.l.s4 %v3172_v17  ;;  %v354_v21 = vshrl.u32 %v353_v19, 7 }
  0x5d   :  { %2812 = vmatprep.subr.bf16.mxu0 %v2951_v1  ;;  %2826 = vmatprep.mubr.bf16.mxu0 %v2958_v4  ;;  %v2956_v7 = vld [vmem:[#allocation7 + $0x30] sm:$0xff]   ;;  %v2959_v9 = vld [vmem:[#allocation2 + $0x8] sm:$0xff]   ;;  %v2960_v10 = vld [vmem:[#allocation2 + $0x10] sm:$0xff]  }
  0x5e   :  { %v2961_v11 = vld [vmem:[#allocation2 + $0x18] sm:$0xff]   ;;  %v2962_v12 = vld [vmem:[#allocation2 + $0x20] sm:$0xff]   ;;  %v2963_v13 = vld [vmem:[#allocation2 + $0x28] sm:$0xff]   ;;  %v352_v20 = vunpack.c.0.s8 %v351_v18 }
  0x5f   :  { %v2964_v14 = vld [vmem:[#allocation2 + $0x30] sm:$0xff]   ;;  %v2965_v15 = vld [vmem:[#allocation2 + $0x38] sm:$0xff]  }
  0x60   :  { %2813 = vmatpush3.bf16.msra.mxu0 %v2951_v1  ;;  %v3296_v24 = vsub.s32 %v352_v20, %v354_v21 }
  0x61   :  { %2814 = vmatprep.subr.bf16.mxu0 %v2952_v2 }
  0x64   :  { %2815 = vmatpush3.bf16.msra.mxu0 %v2952_v2 }
  0x65   :  { %2816 = vmatprep.subr.bf16.mxu0 %v2953_v3 }
  0x68   :  { %2817 = vmatpush3.bf16.msra.mxu0 %v2953_v3 }
  0x69   :  { %2818 = vmatprep.subr.bf16.mxu0 %v2954_v5 }
  0x6c   :  { %2819 = vmatpush3.bf16.msra.mxu0 %v2954_v5 }
  0x6d   :  { %2820 = vmatprep.subr.bf16.mxu0 %v2955_v6 }
  0x70   :  { %2821 = vmatpush3.bf16.msra.mxu0 %v2955_v6 }
  0x71   :  { %2822 = vmatprep.subr.bf16.mxu0 %v2956_v7 }
  0x74   :  { %2823 = vmatpush3.bf16.msra.mxu0 %v2956_v7 }
  0x75   :  { %2824 = vmatprep.subr.bf16.mxu0 %v2957_v8 }
  0x78   :  { %2825 = vmatpush3.bf16.msra.mxu0 %v2957_v8 }
  0x7b   :  { %2827 = vmatmul.mubr.bf16.vlgmr.msra.gmra.mrb[0].mxu0 %v2959_v9 }
  0x7c   :  { %2830 = vmatprep.mubr.bf16.mxu0 %v2960_v10 }
  0x83   :  { %2831 = vmatmul.mubr.bf16.gmra.mrb[4].mxu0 %v2961_v11 }
  0x84   :  { %2834 = vmatprep.mubr.bf16.mxu0 %v2962_v12 }
  0x8b   :  { %2835 = vmatmul.mubr.bf16.gmra.mrb[8].mxu0 %v2963_v13 }
  0x8c   :  { %2838 = vmatprep.mubr.bf16.mxu0 %v2964_v14 }
  0x93   :  { %2839 = vmatmul.mubr.bf16.gmra.mrb[12].mxu0 %v2965_v15 }
  0x94   :  { %701 = vmatprep.mubr.f32.mxu0 %v3171_v16 }
 0x14e   :  { %v2828_v22 = vpop.f32.mrb[0].mxu0 }
 0x14f   :  { %v263_v23 = vpop.f32.mrb[1].mxu0 }
 0x150   :  { %v2829_v25 = vpop.f32.mrb[2].mxu0 }
 0x151   :  { %v344_v26 = vcombine.low %v2828_v22, %v2829_v25  ;;  %v345_v27 = vcombine.high %v2828_v22, %v2829_v25  ;;  %v266_v28 = vpop.f32.mrb[3].mxu0 }
 0x152   :  { %v342_v29 = vcombine.low %v263_v23, %v266_v28  ;;  %v343_v30 = vcombine.high %v263_v23, %v266_v28 }
 0x153   :  { %v370_v31 = vrot.slane %v344_v26, %v3296_v24  ;;  %v377_v32 = vrot.slane %v345_v27, %v3296_v24 }
 0x154   :  { %v356_v33 = vrot.slane %v342_v29, %v3296_v24  ;;  %v363_v34 = vrot.slane %v343_v30, %v3296_v24 }
 0x156   :  { %v406_v35 = vcombine.low %v356_v33, %v370_v31  ;;  %v407_v36 = vcombine.high %v356_v33, %v370_v31  ;;  %v408_v37 = vcombine.low %v363_v34, %v377_v32  ;;  %v409_v38 = vcombine.high %v363_v34, %v377_v32  ;;  %v2832_v39 = vpop.f32.mrb[4].mxu0 }
 0x157   :  { %v279_v40 = vpop.f32.mrb[5].mxu0 }
 0x158   :  { %v2833_v41 = vpop.f32.mrb[6].mxu0  ;;  %v3307_v56 = vrot.slane %v407_v36, %v3296_v24  ;;  %v3310_v58 = vrot.slane %v409_v38, %v3296_v24  ;;  %v420_v0 = vrot.slane %v406_v35, %v3296_v24  ;;  %v427_v4 = vrot.slane %v408_v37, %v3296_v24 }
 0x159   :  { %v348_v42 = vcombine.low %v2832_v39, %v2833_v41  ;;  %v349_v43 = vcombine.high %v2832_v39, %v2833_v41  ;;  %v282_v44 = vpop.f32.mrb[7].mxu0 }
 0x15a   :  { %v346_v45 = vcombine.low %v279_v40, %v282_v44  ;;  %v347_v46 = vcombine.high %v279_v40, %v282_v44 }
 0x15b   :  { %v398_v47 = vrot.slane %v348_v42, %v3296_v24  ;;  %v405_v48 = vrot.slane %v349_v43, %v3296_v24 }
 0x15c   :  { %v384_v49 = vrot.slane %v346_v45, %v3296_v24  ;;  %v391_v50 = vrot.slane %v347_v46, %v3296_v24 }
 0x15e   :  { %v410_v51 = vcombine.low %v384_v49, %v398_v47  ;;  %v411_v52 = vcombine.high %v384_v49, %v398_v47  ;;  %v412_v53 = vcombine.low %v391_v50, %v405_v48  ;;  %v413_v54 = vcombine.high %v391_v50, %v405_v48  ;;  %v2836_v55 = vpop.f32.mrb[8].mxu0 }
 0x15f   :  { %v295_v57 = vpop.f32.mrb[9].mxu0 }
 0x160   :  { %v3313_v59 = vrot.slane %v410_v51, %v3296_v24  ;;  %v3316_v60 = vrot.slane %v411_v52, %v3296_v24  ;;  %v2837_v61 = vpop.f32.mrb[10].mxu0  ;;  %v3319_v62 = vrot.slane %v413_v54, %v3296_v24  ;;  %v3322_v63 = vrot.slane %v412_v53, %v3296_v24 }
 0x161   :  { %v480_v1 = vcombine.low %v2836_v55, %v2837_v61  ;;  %v481_v2 = vcombine.high %v2836_v55, %v2837_v61  ;;  %v298_v3 = vpop.f32.mrb[11].mxu0 }
 0x162   :  { %v478_v5 = vcombine.low %v295_v57, %v298_v3  ;;  %v479_v6 = vcombine.high %v295_v57, %v298_v3  ;;  %v474_v7 = vcombine.low %v3307_v56, %v3316_v60  ;;  %v476_v8 = vcombine.low %v3310_v58, %v3319_v62  ;;  %v3360_v3 = vld [vmem:[#allocation5 + $0x8] sm:$0xff] }
 0x163   :  { %v506_v9 = vrot.slane %v480_v1, %v3296_v24  ;;  %v513_v10 = vrot.slane %v481_v2, %v3296_v24  ;;  %v470_v11 = vcombine.low %v420_v0, %v3313_v59  ;;  %v472_v12 = vcombine.low %v427_v4, %v3322_v63  ;;  %v3354_v1 = vld [vmem:[#allocation5] sm:$0xff]  ;;  %v2966_v2 = vld [vmem:[#allocation8] sm:$0xff]  }
 0x164   :  { %v492_v13 = vrot.slane %v478_v5, %v3296_v24  ;;  %v499_v14 = vrot.slane %v479_v6, %v3296_v24  ;;  %v473_v15 = vcombine.high %v427_v4, %v3322_v63  ;;  %v475_v17 = vcombine.high %v3307_v56, %v3316_v60  ;;  %v2967_v4 = vld [vmem:[#allocation8 + $0x8] sm:$0xff]   ;;  %v2968_v5 = vld [vmem:[#allocation8 + $0x10] sm:$0xff]   ;;  %v2969_v6 = vld [vmem:[#allocation8 + $0x18] sm:$0xff]  }
 0x165   :  { %v477_v18 = vcombine.high %v3310_v58, %v3319_v62  ;;  %v471_v19 = vcombine.high %v420_v0, %v3313_v59 }
 0x166   :  { %v542_v20 = vcombine.low %v492_v13, %v506_v9  ;;  %v543_v21 = vcombine.high %v492_v13, %v506_v9  ;;  %v544_v22 = vcombine.low %v499_v14, %v513_v10  ;;  %v545_v23 = vcombine.high %v499_v14, %v513_v10  ;;  %v2840_v25 = vpop.f32.mrb[12].mxu0  ;;  %v2972_v9 = vld [vmem:[#allocation8 + $0x30] sm:$0xff]   ;;  %v2973_v10 = vld [vmem:[#allocation8 + $0x38] sm:$0xff]  }
 0x167   :  { %v311_v26 = vpop.f32.mrb[13].mxu0 }
 0x168   :  { %v2841_v27 = vpop.f32.mrb[14].mxu0  ;;  %v556_v41 = vrot.slane %v542_v20, %v3296_v24  ;;  %v570_v42 = vrot.slane %v543_v21, %v3296_v24  ;;  %v577_v43 = vrot.slane %v545_v23, %v3296_v24  ;;  %v563_v44 = vrot.slane %v544_v22, %v3296_v24 }
 0x169   :  { %v484_v28 = vcombine.low %v2840_v25, %v2841_v27  ;;  %v485_v29 = vcombine.high %v2840_v25, %v2841_v27  ;;  %v314_v30 = vpop.f32.mrb[15].mxu0 }
 0x16a   :  { %v482_v31 = vcombine.low %v311_v26, %v314_v30  ;;  %v483_v32 = vcombine.high %v311_v26, %v314_v30 }
 0x16b   :  { %v534_v33 = vrot.slane %v484_v28, %v3296_v24  ;;  %v541_v34 = vrot.slane %v485_v29, %v3296_v24 }
 0x16c   :  { %v520_v35 = vrot.slane %v482_v31, %v3296_v24  ;;  %v527_v36 = vrot.slane %v483_v32, %v3296_v24 }
 0x16e   :  { %v546_v37 = vcombine.low %v520_v35, %v534_v33  ;;  %v547_v38 = vcombine.high %v520_v35, %v534_v33  ;;  %v548_v39 = vcombine.low %v527_v36, %v541_v34  ;;  %v549_v40 = vcombine.high %v527_v36, %v541_v34 }
 0x170   :  { %v584_v45 = vrot.slane %v546_v37, %v3296_v24  ;;  %v598_v46 = vrot.slane %v547_v38, %v3296_v24  ;;  %v605_v47 = vrot.slane %v549_v40, %v3296_v24  ;;  %v591_v48 = vrot.slane %v548_v39, %v3296_v24 }
 0x172   :  { %v610_v49 = vcombine.low %v570_v42, %v598_v46  ;;  %v612_v50 = vcombine.low %v577_v43, %v605_v47  ;;  %v606_v51 = vcombine.low %v556_v41, %v584_v45  ;;  %v608_v52 = vcombine.low %v563_v44, %v591_v48 }
 0x173   :  { %v609_v53 = vcombine.high %v563_v44, %v591_v48  ;;  %v611_v54 = vcombine.high %v570_v42, %v598_v46  ;;  %v613_v55 = vcombine.high %v577_v43, %v605_v47  ;;  %v607_v56 = vcombine.high %v556_v41, %v584_v45 }
 0x174   :  { %v2906_v57 = vpack.c.bf16 %v610_v49, %v474_v7  ;;  %v2914_v58 = vpack.c.bf16 %v612_v50, %v476_v8  ;;  %v2908_v59 = vpack.c.bf16 %v606_v51, %v470_v11  ;;  %v2916_v60 = vpack.c.bf16 %v608_v52, %v472_v12  ;;  %v2970_v7 = vld [vmem:[#allocation8 + $0x20] sm:$0xff]   ;;  %v2971_v8 = vld [vmem:[#allocation8 + $0x28] sm:$0xff]  }
 0x175   :  { %v2910_v61 = vpack.c.bf16 %v611_v54, %v475_v17  ;;  %v2918_v62 = vpack.c.bf16 %v613_v55, %v477_v18  ;;  %v2912_v63 = vpack.c.bf16 %v607_v56, %v471_v19  ;;  %v2920_v0 = vpack.c.bf16 %v609_v53, %v473_v15 }
 0x176   :  { %2907 = vmatprep.subr.bf16.mxu0 %v2906_v57  ;;  %2915 = vmatprep.subr.bf16.mxu1 %v2914_v58 }
 0x177   :  { %2909 = vmatpush1.bf16.msra.mxu0 %v2908_v59  ;;  %2917 = vmatpush1.bf16.msra.mxu1 %v2916_v60 }
 0x178   :  { %2911 = vmatprep.subr.bf16.mxu0 %v2910_v61  ;;  %2919 = vmatprep.subr.bf16.mxu1 %v2918_v62 }
 0x17a   :  { %2727 = vmatmul.mubr.msk.f32.vlgmr.msra.gmra.mrb[16].mxu0 %vm630_vm0, %v3354_v1  ;;  %2731 = vmatmul.mubr.msk.f32.vlgmr.msra.gmra.mrb[0].mxu1 %vm630_vm0, %v3354_v1 }
 0x17b   :  { %2913 = vmatpush1.bf16.msra.mxu0 %v2912_v63  ;;  %2921 = vmatpush1.bf16.msra.mxu1 %v2920_v0 }
 0x17c   :  { %707 = vmatprep.mubr.f32.mxu0 %v3171_v16  ;;  %861 = vmatprep.mubr.f32.mxu1 %v3171_v16 }
 0x17d   :  { %2842 = vmatprep.subr.bf16.mxu1 %v2966_v2 }
 0x17e   :  { %2728 = vmatmul.mubr.msk.f32.gmra.mrb[18].mxu0 %vm630_vm0, %v3360_v3  ;;  %2732 = vmatmul.mubr.msk.f32.gmra.mrb[2].mxu1 %vm630_vm0, %v3360_v3 }
 0x17f   :  { %778 = vmatprep.mubr.f32.mxu0 %v3171_v16  ;;  %932 = vmatprep.mubr.f32.mxu1 %v3171_v16 }
 0x182   :  { %2729 = vmatmul.mubr.msk.f32.vlgmr.msra.gmra.mrb[20].mxu0 %vm630_vm0, %v3354_v1  ;;  %2733 = vmatmul.mubr.msk.f32.vlgmr.msra.gmra.mrb[4].mxu1 %vm630_vm0, %v3354_v1 }
 0x183   :  { %784 = vmatprep.mubr.f32.mxu0 %v3171_v16  ;;  %938 = vmatprep.mubr.f32.mxu1 %v3171_v16 }
 0x184   :  { %2843 = vmatpush3.bf16.msra.mxu1 %v2966_v2 }
 0x185   :  { %2844 = vmatprep.subr.bf16.mxu1 %v2967_v4 }
 0x186   :  { %2730 = vmatmul.mubr.msk.f32.gmra.mrb[22].mxu0 %vm630_vm0, %v3360_v3  ;;  %2734 = vmatmul.mubr.msk.f32.gmra.mrb[6].mxu1 %vm630_vm0, %v3360_v3 }
 0x187   :  { %1857 = vmatprep.mubr.f32.mxu0 %v3171_v16 }
 0x188   :  { %2845 = vmatpush3.bf16.msra.mxu1 %v2967_v4 }
 0x189   :  { %2846 = vmatprep.subr.bf16.mxu1 %v2968_v5 }
 0x18c   :  { %2847 = vmatpush3.bf16.msra.mxu1 %v2968_v5 }
 0x18d   :  { %2848 = vmatprep.subr.bf16.mxu1 %v2969_v6 }
 0x190   :  { %2849 = vmatpush3.bf16.msra.mxu1 %v2969_v6 }
 0x191   :  { %2850 = vmatprep.subr.bf16.mxu1 %v2970_v7 }
 0x194   :  { %2851 = vmatpush3.bf16.msra.mxu1 %v2970_v7  ;;  %v3412_v7 = vld [vmem:[%s3631_s3] ss:$0 sm:$0xff] }
 0x195   :  { %2852 = vmatprep.subr.bf16.mxu1 %v2971_v8 }
 0x198   :  { %2853 = vmatpush3.bf16.msra.mxu1 %v2971_v8 }
 0x199   :  { %2854 = vmatprep.subr.bf16.mxu1 %v2972_v9 }
 0x19c   :  { %2855 = vmatpush3.bf16.msra.mxu1 %v2972_v9 }
 0x19d   :  { %2856 = vmatprep.subr.bf16.mxu1 %v2973_v10 }
 0x1a0   :  { %2857 = vmatpush3.bf16.msra.mxu1 %v2973_v10 }
 0x24d   :  { %v703_v11 = vpop.f32.mrb[16].mxu0  ;;  %v857_v12 = vpop.f32.mrb[0].mxu1 }
 0x24e   :  { %v705_v13 = vpop.f32.mrb[17].mxu0  ;;  %v859_v14 = vpop.f32.mrb[1].mxu1 }
 0x24f   :  { %v961_v15 = vcombine.low %v703_v11, %v705_v13  ;;  %v962_v17 = vcombine.high %v703_v11, %v705_v13  ;;  %v965_v18 = vcombine.low %v857_v12, %v859_v14  ;;  %v966_v19 = vcombine.high %v857_v12, %v859_v14 }
 0x251   :  { %v709_v20 = vpop.f32.mrb[18].mxu0  ;;  %v863_v21 = vpop.f32.mrb[2].mxu1  ;;  %v975_v37 = vrot.slane %v961_v15, %v3296_v24  ;;  %v982_v38 = vrot.slane %v962_v17, %v3296_v24  ;;  %v1003_v39 = vrot.slane %v965_v18, %v3296_v24  ;;  %v1010_v40 = vrot.slane %v966_v19, %v3296_v24 }
 0x252   :  { %v711_v22 = vpop.f32.mrb[19].mxu0  ;;  %v865_v23 = vpop.f32.mrb[3].mxu1 }
 0x253   :  { %v1097_v25 = vcombine.low %v709_v20, %v711_v22  ;;  %v1098_v26 = vcombine.high %v709_v20, %v711_v22  ;;  %v1101_v27 = vcombine.low %v863_v21, %v865_v23  ;;  %v1102_v28 = vcombine.high %v863_v21, %v865_v23 }
 0x255   :  { %v780_v29 = vpop.f32.mrb[20].mxu0  ;;  %v934_v30 = vpop.f32.mrb[4].mxu1  ;;  %v1111_v47 = vrot.slane %v1097_v25, %v3296_v24  ;;  %v1118_v48 = vrot.slane %v1098_v26, %v3296_v24  ;;  %v1139_v49 = vrot.slane %v1101_v27, %v3296_v24  ;;  %v1146_v50 = vrot.slane %v1102_v28, %v3296_v24 }
 0x256   :  { %v782_v31 = vpop.f32.mrb[21].mxu0  ;;  %v936_v32 = vpop.f32.mrb[5].mxu1 }
 0x257   :  { %v963_v33 = vcombine.low %v780_v29, %v782_v31  ;;  %v964_v34 = vcombine.high %v780_v29, %v782_v31  ;;  %v967_v35 = vcombine.low %v934_v30, %v936_v32  ;;  %v968_v36 = vcombine.high %v934_v30, %v936_v32 }
 0x259   :  { %v989_v41 = vrot.slane %v963_v33, %v3296_v24  ;;  %v996_v42 = vrot.slane %v964_v34, %v3296_v24  ;;  %v1017_v43 = vrot.slane %v967_v35, %v3296_v24  ;;  %v1024_v44 = vrot.slane %v968_v36, %v3296_v24  ;;  %v786_v45 = vpop.f32.mrb[22].mxu0  ;;  %v940_v46 = vpop.f32.mrb[6].mxu1 }
 0x25a   :  { %v788_v51 = vpop.f32.mrb[23].mxu0  ;;  %v942_v52 = vpop.f32.mrb[7].mxu1 }
 0x25b   :  { %v1025_v53 = vcombine.low %v975_v37, %v989_v41  ;;  %v1026_v54 = vcombine.high %v975_v37, %v989_v41  ;;  %v1027_v55 = vcombine.low %v982_v38, %v996_v42  ;;  %v1028_v56 = vcombine.high %v982_v38, %v996_v42 }
 0x25c   :  { %v1029_v57 = vcombine.low %v1003_v39, %v1017_v43  ;;  %v1030_v58 = vcombine.high %v1003_v39, %v1017_v43  ;;  %v1031_v59 = vcombine.low %v1010_v40, %v1024_v44  ;;  %v1032_v60 = vcombine.high %v1010_v40, %v1024_v44 }
 0x25d   :  { %v1039_v61 = vrot.slane %v1025_v53, %v3296_v24  ;;  %v3395_v62 = vrot.slane %v1027_v55, %v3296_v24  ;;  %v1053_v63 = vrot.slane %v1026_v54, %v3296_v24  ;;  %v3399_v0 = vrot.slane %v1028_v56, %v3296_v24 }
 0x25e   :  { %v1067_v2 = vrot.slane %v1029_v57, %v3296_v24  ;;  %v3403_v4 = vrot.slane %v1031_v59, %v3296_v24  ;;  %v1081_v5 = vrot.slane %v1030_v58, %v3296_v24  ;;  %v3407_v6 = vrot.slane %v1032_v60, %v3296_v24 }
 0x25f   :  { %v1099_v8 = vcombine.low %v786_v45, %v788_v51  ;;  %v1100_v9 = vcombine.high %v786_v45, %v788_v51  ;;  %v1103_v10 = vcombine.low %v940_v46, %v942_v52  ;;  %v1104_v11 = vcombine.high %v940_v46, %v942_v52 }
 0x260   :  { %v1089_v12 = vcombine.low %v1039_v61, %v1067_v2  ;;  %v1090_v13 = vcombine.high %v1039_v61, %v1067_v2  ;;  %v1091_v14 = vcombine.low %v3395_v62, %v3403_v4  ;;  %v1092_v15 = vcombine.high %v3395_v62, %v3403_v4 }
 0x261   :  { %v1093_v17 = vcombine.low %v1053_v63, %v1081_v5  ;;  %v1094_v18 = vcombine.high %v1053_v63, %v1081_v5  ;;  %v1095_v19 = vcombine.low %v3399_v0, %v3407_v6  ;;  %v1096_v20 = vcombine.high %v3399_v0, %v3407_v6 }
 0x262   :  { %v1258_v21 = vadd.f32 %v3412_v7, %v1090_v13  ;;  %v1125_v22 = vrot.slane %v1099_v8, %v3296_v24  ;;  %v1132_v23 = vrot.slane %v1100_v9, %v3296_v24  ;;  %v1153_v25 = vrot.slane %v1103_v10, %v3296_v24 }
 0x263   :  { %v1259_v26 = vadd.f32 %v3412_v7, %v1094_v18  ;;  %v1160_v27 = vrot.slane %v1104_v11, %v3296_v24  ;;  %v1256_v28 = vadd.f32 %v3412_v7, %v1089_v12  ;;  %v1257_v29 = vadd.f32 %v3412_v7, %v1093_v17 }
 0x264   :  { %v1290_v30 = vmul.f32 0.1, %v1258_v21  ;;  %v1161_v31 = vcombine.low %v1111_v47, %v1125_v22  ;;  %v1162_v32 = vcombine.high %v1111_v47, %v1125_v22  ;;  %v1163_v33 = vcombine.low %v1118_v48, %v1132_v23 }
 0x265   :  { %v1291_v34 = vmul.f32 0.1, %v1259_v26  ;;  %v1164_v35 = vcombine.high %v1118_v48, %v1132_v23  ;;  %v1165_v36 = vcombine.low %v1139_v49, %v1153_v25  ;;  %v1166_v37 = vcombine.high %v1139_v49, %v1153_v25 }
 0x266   :  { %v1175_v38 = vrot.slane %v1161_v31, %v3296_v24  ;;  %v3432_v39 = vrot.slane %v1163_v33, %v3296_v24  ;;  %v1189_v40 = vrot.slane %v1162_v32, %v3296_v24  ;;  %v1167_v41 = vcombine.low %v1146_v50, %v1160_v27 }
 0x267   :  { %v3436_v42 = vrot.slane %v1164_v35, %v3296_v24  ;;  %v1168_v43 = vcombine.high %v1146_v50, %v1160_v27  ;;  %v1203_v44 = vrot.slane %v1165_v36, %v3296_v24  ;;  %v1217_v45 = vrot.slane %v1166_v37, %v3296_v24 }
 0x268   :  { %v3441_v46 = vrot.slane %v1167_v41, %v3296_v24  ;;  %vm1272_vm1 = vcmp.gt.f32.partialorder %v1256_v28, 0.0  ;;  %vm1273_vm2 = vcmp.gt.f32.partialorder %v1257_v29, 0.0  ;;  %v1288_v47 = vmul.f32 0.1, %v1256_v28 }
 0x269   :  { %v3444_v48 = vrot.slane %v1168_v43, %v3296_v24  ;;  %v1225_v49 = vcombine.low %v1175_v38, %v1203_v44  ;;  %v1226_v51 = vcombine.high %v1175_v38, %v1203_v44  ;;  %v1229_v52 = vcombine.low %v1189_v40, %v1217_v45 }
 0x26a   :  { %v1227_v53 = vcombine.low %v3432_v39, %v3441_v46  ;;  %v1228_v50 = vcombine.high %v3432_v39, %v3441_v46  ;;  %v1230_v54 = vcombine.high %v1189_v40, %v1217_v45  ;;  %v1289_v55 = vmul.f32 0.1, %v1257_v29 }
 0x26b   :  { %v1231_v56 = vcombine.low %v3436_v42, %v3444_v48  ;;  %v1232_v57 = vcombine.high %v3436_v42, %v3444_v48  ;;  %v1304_v58 = vsel %vm1272_vm1, %v1256_v28, %v1288_v47  ;;  %vm1274_vm3 = vcmp.gt.f32.partialorder %v1258_v21, 0.0 }
 0x26c   :  { %v1305_v59 = vsel %vm1273_vm2, %v1257_v29, %v1289_v55  ;;  %vm1275_vm4 = vcmp.gt.f32.partialorder %v1259_v26, 0.0  ;;  %v1306_v60 = vsel %vm1274_vm3, %v1258_v21, %v1290_v30  ;;  %v1260_v61 = vadd.f32 %v3412_v7, %v1091_v14 }
 0x26d   :  { %v1320_v62 = vpack.c.bf16 %v1305_v59, %v1304_v58  ;;  %v1307_v63 = vsel %vm1275_vm4, %v1259_v26, %v1291_v34  ;;  %v1261_v0 = vadd.f32 %v3412_v7, %v1095_v19  ;;  %v1262_v2 = vadd.f32 %v3412_v7, %v1092_v15 }
 0x26e   :  { %v1321_v4 = vpack.c.bf16 %v1307_v63, %v1306_v60  ;;  %vm1276_vm5 = vcmp.gt.f32.partialorder %v1260_v61, 0.0  ;;  %v1292_v5 = vmul.f32 0.1, %v1260_v61  ;;  %v1263_v6 = vadd.f32 %v3412_v7, %v1096_v20 }
 0x26f   :  { %2858 = vmatprep.mubr.bf16.mxu1 %v1320_v62  ;;  %vm1277_vm6 = vcmp.gt.f32.partialorder %v1261_v0, 0.0  ;;  %v1293_v8 = vmul.f32 0.1, %v1261_v0  ;;  %vm1278_vm7 = vcmp.gt.f32.partialorder %v1262_v2, 0.0  ;;  %v1294_v9 = vmul.f32 0.1, %v1262_v2 }
 0x270   :  { %2859 = vmatmul.mubr.bf16.vlgmr.msra.gmra.mrb[8].mxu1 %v1321_v4  ;;  %v1308_v10 = vsel %vm1276_vm5, %v1260_v61, %v1292_v5  ;;  %vm1279_vm8 = vcmp.gt.f32.partialorder %v1263_v6, 0.0  ;;  %v1295_v11 = vmul.f32 0.1, %v1263_v6  ;;  %v1264_v12 = vadd.f32 %v3412_v7, %v1225_v49 }
 0x271   :  { %v1309_v13 = vsel %vm1277_vm6, %v1261_v0, %v1293_v8  ;;  %v1310_v14 = vsel %vm1278_vm7, %v1262_v2, %v1294_v9  ;;  %v1265_v15 = vadd.f32 %v3412_v7, %v1229_v52  ;;  %v1266_v17 = vadd.f32 %v3412_v7, %v1226_v51 }
 0x272   :  { %v1322_v18 = vpack.c.bf16 %v1309_v13, %v1308_v10  ;;  %v1311_v19 = vsel %vm1279_vm8, %v1263_v6, %v1295_v11  ;;  %vm1280_vm9 = vcmp.gt.f32.partialorder %v1264_v12, 0.0  ;;  %v1296_v20 = vmul.f32 0.1, %v1264_v12 }
 0x273   :  { %v1323_v21 = vpack.c.bf16 %v1311_v19, %v1310_v14  ;;  %vm1281_vm10 = vcmp.gt.f32.partialorder %v1265_v15, 0.0  ;;  %v1297_v22 = vmul.f32 0.1, %v1265_v15  ;;  %v1267_v23 = vadd.f32 %v3412_v7, %v1230_v54 }
 0x274   :  { %2862 = vmatprep.mubr.bf16.mxu1 %v1322_v18  ;;  %v1312_v25 = vsel %vm1280_vm9, %v1264_v12, %v1296_v20  ;;  %vm1282_vm11 = vcmp.gt.f32.partialorder %v1266_v17, 0.0  ;;  %v1298_v26 = vmul.f32 0.1, %v1266_v17  ;;  %v1268_v27 = vadd.f32 %v3412_v7, %v1227_v53 }
 0x275   :  { %v1313_v28 = vsel %vm1281_vm10, %v1265_v15, %v1297_v22  ;;  %vm1283_vm12 = vcmp.gt.f32.partialorder %v1267_v23, 0.0  ;;  %v1299_v29 = vmul.f32 0.1, %v1267_v23  ;;  %v1269_v30 = vadd.f32 %v3412_v7, %v1231_v56 }
 0x276   :  { %v1324_v31 = vpack.c.bf16 %v1313_v28, %v1312_v25  ;;  %v1314_v32 = vsel %vm1282_vm11, %v1266_v17, %v1298_v26  ;;  %vm1284_vm13 = vcmp.gt.f32.partialorder %v1268_v27, 0.0  ;;  %v1300_v33 = vmul.f32 0.1, %v1268_v27 }
 0x277   :  { %v1315_v34 = vsel %vm1283_vm12, %v1267_v23, %v1299_v29  ;;  %vm1285_vm14 = vcmp.gt.f32.partialorder %v1269_v30, 0.0  ;;  %v1301_v35 = vmul.f32 0.1, %v1269_v30  ;;  %v1270_v36 = vadd.f32 %v3412_v7, %v1228_v50 }
 0x278   :  { %2863 = vmatmul.mubr.bf16.gmra.mrb[12].mxu1 %v1323_v21  ;;  %v1325_v37 = vpack.c.bf16 %v1315_v34, %v1314_v32  ;;  %v1316_v38 = vsel %vm1284_vm13, %v1268_v27, %v1300_v33  ;;  %v1271_v39 = vadd.f32 %v3412_v7, %v1232_v57 }
 0x279   :  { %2866 = vmatprep.mubr.bf16.mxu1 %v1324_v31  ;;  %v1317_v40 = vsel %vm1285_vm14, %v1269_v30, %v1301_v35  ;;  %vm1286_vm15 = vcmp.gt.f32.partialorder %v1270_v36, 0.0  ;;  %v1302_v41 = vmul.f32 0.1, %v1270_v36 }
 0x27a   :  { %v1326_v42 = vpack.c.bf16 %v1317_v40, %v1316_v38  ;;  %vm1287_vm1 = vcmp.gt.f32.partialorder %v1271_v39, 0.0  ;;  %v1303_v43 = vmul.f32 0.1, %v1271_v39 }
 0x27b   :  { %v1318_v44 = vsel %vm1286_vm15, %v1270_v36, %v1302_v41 }
 0x27c   :  { %v1319_v45 = vsel %vm1287_vm1, %v1271_v39, %v1303_v43 }
 0x27d   :  { %v1327_v46 = vpack.c.bf16 %v1319_v45, %v1318_v44 }
 0x280   :  { %2867 = vmatmul.mubr.bf16.gmra.mrb[16].mxu1 %v1325_v37 }
 0x281   :  { %2870 = vmatprep.mubr.bf16.mxu1 %v1326_v42 }
 0x288   :  { %2871 = vmatmul.mubr.bf16.gmra.mrb[20].mxu1 %v1327_v46 }
 0x343   :  { %v2860_v47 = vpop.f32.mrb[8].mxu1 }
 0x344   :  { %v1426_v48 = vpop.f32.mrb[9].mxu1 }
 0x345   :  { %v2861_v49 = vpop.f32.mrb[10].mxu1 }
 0x346   :  { %v1507_v51 = vcombine.low %v2860_v47, %v2861_v49  ;;  %v1508_v52 = vcombine.high %v2860_v47, %v2861_v49  ;;  %v1429_v53 = vpop.f32.mrb[11].mxu1 }
 0x347   :  { %v1505_v7 = vcombine.low %v1426_v48, %v1429_v53  ;;  %v1506_v50 = vcombine.high %v1426_v48, %v1429_v53 }
 0x348   :  { %v1533_v54 = vrot.slane %v1507_v51, %v3296_v24  ;;  %v1540_v55 = vrot.slane %v1508_v52, %v3296_v24 }
 0x349   :  { %v1519_v56 = vrot.slane %v1505_v7, %v3296_v24  ;;  %v1526_v57 = vrot.slane %v1506_v50, %v3296_v24 }
 0x34b   :  { %v1569_v58 = vcombine.low %v1519_v56, %v1533_v54  ;;  %v1570_v59 = vcombine.high %v1519_v56, %v1533_v54  ;;  %v1571_v60 = vcombine.low %v1526_v57, %v1540_v55  ;;  %v1572_v61 = vcombine.high %v1526_v57, %v1540_v55  ;;  %v2864_v62 = vpop.f32.mrb[12].mxu1 }
 0x34c   :  { %v1442_v63 = vpop.f32.mrb[13].mxu1 }
 0x34d   :  { %v2865_v0 = vpop.f32.mrb[14].mxu1  ;;  %v3475_v19 = vrot.slane %v1569_v58, %v3296_v24  ;;  %v3478_v20 = vrot.slane %v1570_v59, %v3296_v24  ;;  %v3491_v28 = vrot.slane %v1571_v60, %v3296_v24  ;;  %v1604_v29 = vrot.slane %v1572_v61, %v3296_v24 }
 0x34e   :  { %v1511_v2 = vcombine.low %v2864_v62, %v2865_v0  ;;  %v1512_v4 = vcombine.high %v2864_v62, %v2865_v0  ;;  %v1445_v5 = vpop.f32.mrb[15].mxu1 }
 0x34f   :  { %v1509_v6 = vcombine.low %v1442_v63, %v1445_v5  ;;  %v1510_v8 = vcombine.high %v1442_v63, %v1445_v5 }
 0x350   :  { %v1561_v9 = vrot.slane %v1511_v2, %v3296_v24  ;;  %v1568_v10 = vrot.slane %v1512_v4, %v3296_v24 }
 0x351   :  { %v1547_v11 = vrot.slane %v1509_v6, %v3296_v24  ;;  %v1554_v12 = vrot.slane %v1510_v8, %v3296_v24 }
 0x353   :  { %v1573_v13 = vcombine.low %v1547_v11, %v1561_v9  ;;  %v1574_v14 = vcombine.high %v1547_v11, %v1561_v9  ;;  %v1575_v15 = vcombine.low %v1554_v12, %v1568_v10  ;;  %v1576_v17 = vcombine.high %v1554_v12, %v1568_v10  ;;  %v2868_v18 = vpop.f32.mrb[16].mxu1 }
 0x354   :  { %v1458_v21 = vpop.f32.mrb[17].mxu1 }
 0x355   :  { %v3481_v22 = vrot.slane %v1573_v13, %v3296_v24  ;;  %v3484_v23 = vrot.slane %v1575_v15, %v3296_v24  ;;  %v1625_v25 = vrot.slane %v1574_v14, %v3296_v24  ;;  %v3488_v26 = vrot.slane %v1576_v17, %v3296_v24  ;;  %v2869_v27 = vpop.f32.mrb[18].mxu1 }
 0x356   :  { %v1643_v30 = vcombine.low %v2868_v18, %v2869_v27  ;;  %v1644_v31 = vcombine.high %v2868_v18, %v2869_v27  ;;  %v1461_v32 = vpop.f32.mrb[19].mxu1 }
 0x357   :  { %v1641_v33 = vcombine.low %v1458_v21, %v1461_v32  ;;  %v1642_v34 = vcombine.high %v1458_v21, %v1461_v32  ;;  %v1637_v35 = vcombine.low %v3478_v20, %v1625_v25  ;;  %v1633_v36 = vcombine.low %v3475_v19, %v3481_v22  ;;  %v2975_v32 = vld [vmem:[#allocation10 + $0x8] sm:$0xff]  }
 0x358   :  { %v1669_v37 = vrot.slane %v1643_v30, %v3296_v24  ;;  %v1676_v38 = vrot.slane %v1644_v31, %v3296_v24  ;;  %v1638_v39 = vcombine.high %v3478_v20, %v1625_v25  ;;  %v1634_v40 = vcombine.high %v3475_v19, %v3481_v22  ;;  %v2974_v31 = vld [vmem:[#allocation10] sm:$0xff]  }
 0x359   :  { %v1655_v41 = vrot.slane %v1641_v33, %v3296_v24  ;;  %v1662_v42 = vrot.slane %v1642_v34, %v3296_v24  ;;  %v1639_v43 = vcombine.low %v1604_v29, %v3488_v26  ;;  %v1635_v44 = vcombine.low %v3491_v28, %v3484_v23  ;;  %2874 = vmatprep.subr.bf16.mxu1 %v2974_v31  ;;  %v2976_v33 = vld [vmem:[#allocation10 + $0x10] sm:$0xff]   ;;  %v2977_v34 = vld [vmem:[#allocation10 + $0x18] sm:$0xff]  }
 0x35a   :  { %v1640_v45 = vcombine.high %v1604_v29, %v3488_v26  ;;  %v1636_v46 = vcombine.high %v3491_v28, %v3484_v23  ;;  %2875 = vmatpush3.bf16.msra.mxu1 %v2974_v31 }
 0x35b   :  { %v1705_v47 = vcombine.low %v1655_v41, %v1669_v37  ;;  %v1706_v48 = vcombine.high %v1655_v41, %v1669_v37  ;;  %v1707_v49 = vcombine.low %v1662_v42, %v1676_v38  ;;  %v1708_v51 = vcombine.high %v1662_v42, %v1676_v38  ;;  %v2872_v52 = vpop.f32.mrb[20].mxu1  ;;  %2876 = vmatprep.subr.bf16.mxu1 %v2975_v32 }
 0x35c   :  { %v1474_v53 = vpop.f32.mrb[21].mxu1 }
 0x35d   :  { %v2873_v7 = vpop.f32.mrb[22].mxu1  ;;  %v1719_v4 = vrot.slane %v1705_v47, %v3296_v24  ;;  %v1733_v5 = vrot.slane %v1706_v48, %v3296_v24  ;;  %v1726_v11 = vrot.slane %v1707_v49, %v3296_v24  ;;  %v1740_v12 = vrot.slane %v1708_v51, %v3296_v24 }
 0x35e   :  { %v1647_v50 = vcombine.low %v2872_v52, %v2873_v7  ;;  %v1648_v54 = vcombine.high %v2872_v52, %v2873_v7  ;;  %v1477_v55 = vpop.f32.mrb[23].mxu1  ;;  %2877 = vmatpush3.bf16.msra.mxu1 %v2975_v32 }
 0x35f   :  { %v1645_v56 = vcombine.low %v1474_v53, %v1477_v55  ;;  %v1646_v57 = vcombine.high %v1474_v53, %v1477_v55  ;;  %2878 = vmatprep.subr.bf16.mxu1 %v2976_v33 }
 0x360   :  { %v1697_v58 = vrot.slane %v1647_v50, %v3296_v24  ;;  %v1704_v59 = vrot.slane %v1648_v54, %v3296_v24 }
 0x361   :  { %v1683_v60 = vrot.slane %v1645_v56, %v3296_v24  ;;  %v1690_v61 = vrot.slane %v1646_v57, %v3296_v24 }
 0x362   :  { %2879 = vmatpush3.bf16.msra.mxu1 %v2976_v33 }
 0x363   :  { %v1709_v62 = vcombine.low %v1683_v60, %v1697_v58  ;;  %v1710_v63 = vcombine.high %v1683_v60, %v1697_v58  ;;  %v1711_v0 = vcombine.low %v1690_v61, %v1704_v59  ;;  %v1712_v2 = vcombine.high %v1690_v61, %v1704_v59  ;;  %2880 = vmatprep.subr.bf16.mxu1 %v2977_v34 }
 0x365   :  { %v1747_v6 = vrot.slane %v1709_v62, %v3296_v24  ;;  %v1754_v8 = vrot.slane %v1711_v0, %v3296_v24  ;;  %v1761_v9 = vrot.slane %v1710_v63, %v3296_v24  ;;  %v1768_v10 = vrot.slane %v1712_v2, %v3296_v24 }
 0x366   :  { %2881 = vmatpush3.bf16.msra.mxu1 %v2977_v34 }
 0x367   :  { %v1773_v13 = vcombine.low %v1733_v5, %v1761_v9  ;;  %v1769_v14 = vcombine.low %v1719_v4, %v1747_v6  ;;  %v1774_v15 = vcombine.high %v1733_v5, %v1761_v9  ;;  %v1770_v17 = vcombine.high %v1719_v4, %v1747_v6 }
 0x368   :  { %v1775_v18 = vcombine.low %v1740_v12, %v1768_v10  ;;  %v1771_v19 = vcombine.low %v1726_v11, %v1754_v8  ;;  %v1776_v20 = vcombine.high %v1740_v12, %v1768_v10  ;;  %v1772_v21 = vcombine.high %v1726_v11, %v1754_v8 }
 0x369   :  { %v2922_v22 = vpack.c.bf16 %v1773_v13, %v1637_v35  ;;  %v2924_v23 = vpack.c.bf16 %v1769_v14, %v1633_v36  ;;  %v2926_v25 = vpack.c.bf16 %v1774_v15, %v1638_v39  ;;  %v2928_v26 = vpack.c.bf16 %v1770_v17, %v1634_v40  ;;  %v2978_v35 = vld [vmem:[#allocation10 + $0x20] sm:$0xff]  }
 0x36a   :  { %v2930_v27 = vpack.c.bf16 %v1775_v18, %v1639_v43  ;;  %v2932_v28 = vpack.c.bf16 %v1771_v19, %v1635_v44  ;;  %v2934_v29 = vpack.c.bf16 %v1776_v20, %v1640_v45  ;;  %v2936_v30 = vpack.c.bf16 %v1772_v21, %v1636_v46  ;;  %2882 = vmatprep.subr.bf16.mxu1 %v2978_v35 }
 0x36b   :  { %2923 = vmatprep.subr.bf16.mxu0 %v2922_v22  ;;  %2883 = vmatpush3.bf16.msra.mxu1 %v2978_v35 }
 0x36c   :  { %2925 = vmatpush1.bf16.msra.mxu0 %v2924_v23 }
 0x36d   :  { %2927 = vmatprep.subr.bf16.mxu0 %v2926_v25 }
 0x36f   :  { %2744 = vmatmul.mubr.msk.f32.vlgmr.msra.gmra.mrb[24].mxu0 %vm630_vm0, %v3354_v1 }
 0x370   :  { %2929 = vmatpush1.bf16.msra.mxu0 %v2928_v26  ;;  %1863 = vmatprep.mubr.f32.mxu0 %v3171_v16 }
 0x371   :  { %2931 = vmatprep.subr.bf16.mxu0 %v2930_v27 }
 0x373   :  { %2745 = vmatmul.mubr.msk.f32.gmra.mrb[26].mxu0 %vm630_vm0, %v3360_v3 }
 0x374   :  { %1934 = vmatprep.mubr.f32.mxu0 %v3171_v16 }
 0x377   :  { %2746 = vmatmul.mubr.msk.f32.vlgmr.msra.gmra.mrb[28].mxu0 %vm630_vm0, %v3354_v1 }
 0x378   :  { %2933 = vmatpush1.bf16.msra.mxu0 %v2932_v28  ;;  %1940 = vmatprep.mubr.f32.mxu0 %v3171_v16 }
 0x379   :  { %2935 = vmatprep.subr.bf16.mxu0 %v2934_v29 }
 0x37b   :  { %2747 = vmatmul.mubr.msk.f32.gmra.mrb[30].mxu0 %vm630_vm0, %v3360_v3 }
 0x37c   :  { %2011 = vmatprep.mubr.f32.mxu0 %v3171_v16 }
 0x37f   :  { %2748 = vmatmul.mubr.msk.f32.vlgmr.msra.gmra.mrb[32].mxu0 %vm630_vm0, %v3354_v1 }
 0x380   :  { %2937 = vmatpush1.bf16.msra.mxu0 %v2936_v30  ;;  %2017 = vmatprep.mubr.f32.mxu0 %v3171_v16 }
 0x383   :  { %2749 = vmatmul.mubr.msk.f32.gmra.mrb[34].mxu0 %vm630_vm0, %v3360_v3 }
 0x384   :  { %2088 = vmatprep.mubr.f32.mxu0 %v3171_v16 }
 0x387   :  { %2750 = vmatmul.mubr.msk.f32.vlgmr.msra.gmra.mrb[36].mxu0 %vm630_vm0, %v3354_v1  ;;  %v2979_v1 = vld [vmem:[#allocation10 + $0x28] sm:$0xff]  }
 0x388   :  { %2094 = vmatprep.mubr.f32.mxu0 %v3171_v16  ;;  %v2980_v16 = vld [vmem:[#allocation10 + $0x30] sm:$0xff]   ;;  %2884 = vmatprep.subr.bf16.mxu1 %v2979_v1 }
 0x389   :  { %2885 = vmatpush3.bf16.msra.mxu1 %v2979_v1 }
 0x38a   :  { %2886 = vmatprep.subr.bf16.mxu1 %v2980_v16 }
 0x38b   :  { %2751 = vmatmul.mubr.msk.f32.gmra.mrb[38].mxu0 %vm630_vm0, %v3360_v3  ;;  %v2981_v3 = vld [vmem:[#allocation10 + $0x38] sm:$0xff]  }
 0x38d   :  { %2887 = vmatpush3.bf16.msra.mxu1 %v2980_v16 }
 0x38e   :  { %2888 = vmatprep.subr.bf16.mxu1 %v2981_v3 }
 0x391   :  { %2889 = vmatpush3.bf16.msra.mxu1 %v2981_v3 }
 0x442   :  { %v1859_v36 = vpop.f32.mrb[24].mxu0 }
 0x443   :  { %v1861_v37 = vpop.f32.mrb[25].mxu0 }
 0x444   :  { %v2117_v38 = vcombine.low %v1859_v36, %v1861_v37  ;;  %v2118_v39 = vcombine.high %v1859_v36, %v1861_v37 }
 0x446   :  { %v1865_v40 = vpop.f32.mrb[26].mxu0  ;;  %v2131_v48 = vrot.slane %v2117_v38, %v3296_v24  ;;  %v2138_v49 = vrot.slane %v2118_v39, %v3296_v24 }
 0x447   :  { %v1867_v41 = vpop.f32.mrb[27].mxu0 }
 0x448   :  { %v2253_v42 = vcombine.low %v1865_v40, %v1867_v41  ;;  %v2254_v43 = vcombine.high %v1865_v40, %v1867_v41 }
 0x44a   :  { %v1936_v44 = vpop.f32.mrb[28].mxu0  ;;  %v2267_v60 = vrot.slane %v2253_v42, %v3296_v24  ;;  %v2274_v61 = vrot.slane %v2254_v43, %v3296_v24  ;;  %v2752_v43 = vld [vmem:[%s3633_s5] ss:$0 sm:$0xff] }
 0x44b   :  { %v1938_v45 = vpop.f32.mrb[29].mxu0 }
 0x44c   :  { %v2119_v46 = vcombine.low %v1936_v44, %v1938_v45  ;;  %v2120_v47 = vcombine.high %v1936_v44, %v1938_v45 }
 0x44e   :  { %v2145_v51 = vrot.slane %v2119_v46, %v3296_v24  ;;  %v2152_v52 = vrot.slane %v2120_v47, %v3296_v24  ;;  %v1942_v53 = vpop.f32.mrb[30].mxu0 }
 0x44f   :  { %v1944_v7 = vpop.f32.mrb[31].mxu0 }
 0x450   :  { %v2181_v50 = vcombine.low %v2131_v48, %v2145_v51  ;;  %v2182_v54 = vcombine.high %v2131_v48, %v2145_v51  ;;  %v2183_v55 = vcombine.low %v2138_v49, %v2152_v52  ;;  %v2184_v56 = vcombine.high %v2138_v49, %v2152_v52 }
 0x451   :  { %v2255_v57 = vcombine.low %v1942_v53, %v1944_v7  ;;  %v2256_v58 = vcombine.high %v1942_v53, %v1944_v7 }
 0x452   :  { %v2013_v59 = vpop.f32.mrb[32].mxu0  ;;  %v2195_v19 = vrot.slane %v2181_v50, %v3296_v24  ;;  %v3555_v20 = vrot.slane %v2183_v55, %v3296_v24  ;;  %v2209_v27 = vrot.slane %v2182_v54, %v3296_v24  ;;  %v3563_v28 = vrot.slane %v2184_v56, %v3296_v24 }
 0x453   :  { %v2281_v62 = vrot.slane %v2255_v57, %v3296_v24  ;;  %v2288_v63 = vrot.slane %v2256_v58, %v3296_v24  ;;  %v2015_v0 = vpop.f32.mrb[33].mxu0 }
 0x454   :  { %v2121_v2 = vcombine.low %v2013_v59, %v2015_v0  ;;  %v2122_v4 = vcombine.high %v2013_v59, %v2015_v0 }
 0x455   :  { %v2317_v5 = vcombine.low %v2267_v60, %v2281_v62  ;;  %v2318_v6 = vcombine.high %v2267_v60, %v2281_v62  ;;  %v2319_v8 = vcombine.low %v2274_v61, %v2288_v63  ;;  %v2320_v9 = vcombine.high %v2274_v61, %v2288_v63 }
 0x456   :  { %v2019_v10 = vpop.f32.mrb[34].mxu0  ;;  %v2159_v21 = vrot.slane %v2121_v2, %v3296_v24  ;;  %v2166_v22 = vrot.slane %v2122_v4, %v3296_v24 }
 0x457   :  { %v2021_v11 = vpop.f32.mrb[35].mxu0  ;;  %v2331_v29 = vrot.slane %v2317_v5, %v3296_v24  ;;  %v2338_v30 = vrot.slane %v2319_v8, %v3296_v24  ;;  %v2345_v1 = vrot.slane %v2318_v6, %v3296_v24  ;;  %v2352_v16 = vrot.slane %v2320_v9, %v3296_v24 }
 0x458   :  { %v2257_v12 = vcombine.low %v2019_v10, %v2021_v11  ;;  %v2258_v13 = vcombine.high %v2019_v10, %v2021_v11 }
 0x45a   :  { %v2090_v14 = vpop.f32.mrb[36].mxu0  ;;  %v2295_v41 = vrot.slane %v2257_v12, %v3296_v24  ;;  %v2302_v42 = vrot.slane %v2258_v13, %v3296_v24 }
 0x45b   :  { %v2092_v15 = vpop.f32.mrb[37].mxu0 }
 0x45c   :  { %v2123_v17 = vcombine.low %v2090_v14, %v2092_v15  ;;  %v2124_v18 = vcombine.high %v2090_v14, %v2092_v15 }
 0x45e   :  { %v2173_v23 = vrot.slane %v2123_v17, %v3296_v24  ;;  %v2180_v25 = vrot.slane %v2124_v18, %v3296_v24  ;;  %v2096_v26 = vpop.f32.mrb[38].mxu0 }
 0x45f   :  { %v2098_v31 = vpop.f32.mrb[39].mxu0 }
 0x460   :  { %v2185_v32 = vcombine.low %v2159_v21, %v2173_v23  ;;  %v2186_v33 = vcombine.high %v2159_v21, %v2173_v23  ;;  %v2187_v34 = vcombine.low %v2166_v22, %v2180_v25  ;;  %v2188_v35 = vcombine.high %v2166_v22, %v2180_v25 }
 0x461   :  { %v2259_v3 = vcombine.low %v2096_v26, %v2098_v31  ;;  %v2260_v36 = vcombine.high %v2096_v26, %v2098_v31 }
 0x462   :  { %v2223_v37 = vrot.slane %v2185_v32, %v3296_v24  ;;  %v2230_v38 = vrot.slane %v2187_v34, %v3296_v24  ;;  %v2237_v39 = vrot.slane %v2186_v33, %v3296_v24  ;;  %v3573_v40 = vrot.slane %v2188_v35, %v3296_v24  ;;  %v3014_v35 = vld [vmem:[#allocation2 + $0x8] sm:$0xff]  }
 0x463   :  { %v2309_v44 = vrot.slane %v2259_v3, %v3296_v24  ;;  %v2316_v45 = vrot.slane %v2260_v36, %v3296_v24  ;;  %v3015_v36 = vld [vmem:[#allocation2] sm:$0xff]  }
 0x464   :  { %v2245_v46 = vcombine.low %v2195_v19, %v2223_v37  ;;  %v2246_v47 = vcombine.high %v2195_v19, %v2223_v37  ;;  %v2247_v48 = vcombine.low %v3555_v20, %v2230_v38  ;;  %v2248_v49 = vcombine.high %v3555_v20, %v2230_v38 }
 0x465   :  { %v2249_v51 = vcombine.low %v2209_v27, %v2237_v39  ;;  %v2250_v52 = vcombine.high %v2209_v27, %v2237_v39  ;;  %v2251_v53 = vcombine.low %v3563_v28, %v3573_v40  ;;  %v2252_v7 = vcombine.high %v3563_v28, %v3573_v40 }
 0x466   :  { %v2414_v50 = vadd.f32 %v2752_v43, %v2246_v47  ;;  %v2321_v54 = vcombine.low %v2295_v41, %v2309_v44  ;;  %v2322_v55 = vcombine.high %v2295_v41, %v2309_v44  ;;  %v2323_v56 = vcombine.low %v2302_v42, %v2316_v45 }
 0x467   :  { %v2415_v57 = vadd.f32 %v2752_v43, %v2250_v52  ;;  %v2324_v58 = vcombine.high %v2302_v42, %v2316_v45  ;;  %v2412_v59 = vadd.f32 %v2752_v43, %v2245_v46  ;;  %v2413_v60 = vadd.f32 %v2752_v43, %v2249_v51 }
 0x468   :  { %vm2430_vm0 = vcmp.gt.f32.partialorder %v2414_v50, 0.0  ;;  %v2446_v61 = vmul.f32 0.1, %v2414_v50  ;;  %v2359_v62 = vrot.slane %v2321_v54, %v3296_v24  ;;  %v2366_v63 = vrot.slane %v2323_v56, %v3296_v24 }
 0x469   :  { %vm2431_vm2 = vcmp.gt.f32.partialorder %v2415_v57, 0.0  ;;  %v2447_v0 = vmul.f32 0.1, %v2415_v57  ;;  %v2373_v2 = vrot.slane %v2322_v55, %v3296_v24  ;;  %v2380_v4 = vrot.slane %v2324_v58, %v3296_v24 }
 0x46a   :  { %v2381_v5 = vcombine.low %v2331_v29, %v2359_v62  ;;  %v2382_v6 = vcombine.high %v2331_v29, %v2359_v62  ;;  %v2383_v8 = vcombine.low %v2338_v30, %v2366_v63  ;;  %v2384_v9 = vcombine.high %v2338_v30, %v2366_v63  ;;  %v3017_v62 = vld [vmem:[#allocation2 + $0x18] sm:$0xff]  }
 0x46b   :  { %v2385_v10 = vcombine.low %v2345_v1, %v2373_v2  ;;  %v2386_v11 = vcombine.high %v2345_v1, %v2373_v2  ;;  %v2387_v12 = vcombine.low %v2352_v16, %v2380_v4  ;;  %v2388_v13 = vcombine.high %v2352_v16, %v2380_v4  ;;  %v3018_v4 = vld [vmem:[#allocation2 + $0x20] sm:$0xff]  }
 0x46c   :  { %v2420_v14 = vadd.f32 %v2752_v43, %v2381_v5  ;;  %v2422_v15 = vadd.f32 %v2752_v43, %v2382_v6  ;;  %v3592_v17 = vadd.f32 %v2752_v43, %v2383_v8  ;;  %v3594_v18 = vadd.f32 %v2752_v43, %v2384_v9 }
 0x46d   :  { %v2421_v19 = vadd.f32 %v2752_v43, %v2385_v10  ;;  %v2423_v20 = vadd.f32 %v2752_v43, %v2386_v11  ;;  %v2425_v21 = vadd.f32 %v2752_v43, %v2387_v12  ;;  %v3596_v22 = vadd.f32 %v2752_v43, %v2388_v13  ;;  %v3019_v10 = vld [vmem:[#allocation2 + $0x28] sm:$0xff]   ;;  %v3020_v12 = vld [vmem:[#allocation2 + $0x30] sm:$0xff]  }
 0x46e   :  { %vm2428_vm3 = vcmp.gt.f32.partialorder %v2412_v59, 0.0  ;;  %vm2429_vm4 = vcmp.gt.f32.partialorder %v2413_v60, 0.0  ;;  %v2444_v24 = vmul.f32 0.1, %v2412_v59  ;;  %v2445_v23 = vmul.f32 0.1, %v2413_v60 }
 0x46f   :  { %v2462_v25 = vsel %vm2430_vm0, %v2414_v50, %v2446_v61  ;;  %v2463_v26 = vsel %vm2431_vm2, %v2415_v57, %v2447_v0  ;;  %v2416_v27 = vadd.f32 %v2752_v43, %v2247_v48  ;;  %v2417_v28 = vadd.f32 %v2752_v43, %v2251_v53  ;;  %v3016_v48 = vld [vmem:[#allocation2 + $0x10] sm:$0xff]  }
 0x470   :  { %v2460_v29 = vsel %vm2428_vm3, %v2412_v59, %v2444_v24  ;;  %v2461_v30 = vsel %vm2429_vm4, %v2413_v60, %v2445_v23  ;;  %v2477_v31 = vpack.c.bf16 %v2463_v26, %v2462_v25  ;;  %v2418_v32 = vadd.f32 %v2752_v43, %v2248_v49 }
 0x471   :  { %v2476_v33 = vpack.c.bf16 %v2461_v30, %v2460_v29  ;;  %vm2432_vm5 = vcmp.gt.f32.partialorder %v2416_v27, 0.0  ;;  %vm2433_vm6 = vcmp.gt.f32.partialorder %v2417_v28, 0.0  ;;  %v2448_v34 = vmul.f32 0.1, %v2416_v27 }
 0x472   :  { %v2485_v1 = vadd.bf16 %v3014_v35, %v2477_v31  ;;  %v2449_v16 = vmul.f32 0.1, %v2417_v28  ;;  %v2419_v3 = vadd.f32 %v2752_v43, %v2252_v7  ;;  %vm2434_vm7 = vcmp.gt.f32.partialorder %v2418_v32, 0.0 }
 0x473   :  { %v2484_v37 = vadd.bf16 %v3015_v36, %v2476_v33  ;;  %v2464_v38 = vsel %vm2432_vm5, %v2416_v27, %v2448_v34  ;;  %v2450_v39 = vmul.f32 0.1, %v2418_v32  ;;  %vm2436_vm8 = vcmp.gt.f32.partialorder %v2420_v14, 0.0 }
 0x474   :  { %v2465_v40 = vsel %vm2433_vm6, %v2417_v28, %v2449_v16  ;;  %vm2435_vm9 = vcmp.gt.f32.partialorder %v2419_v3, 0.0  ;;  %v2451_v41 = vmul.f32 0.1, %v2419_v3  ;;  %vm2437_vm10 = vcmp.gt.f32.partialorder %v2421_v19, 0.0 }
 0x475   :  { %2890 = vmatprep.mubr.bf16.mxu1 %v2484_v37  ;;  %v2478_v42 = vpack.c.bf16 %v2465_v40, %v2464_v38  ;;  %v2466_v44 = vsel %vm2434_vm7, %v2418_v32, %v2450_v39  ;;  %v2452_v45 = vmul.f32 0.1, %v2420_v14  ;;  %v2453_v46 = vmul.f32 0.1, %v2421_v19 }
 0x476   :  { %2891 = vmatmul.mubr.bf16.vlgmr.msra.gmra.mrb[24].mxu1 %v2485_v1  ;;  %v2467_v47 = vsel %vm2435_vm9, %v2419_v3, %v2451_v41  ;;  %vm2438_vm11 = vcmp.gt.f32.partialorder %v2422_v15, 0.0  ;;  %vm2439_vm12 = vcmp.gt.f32.partialorder %v2423_v20, 0.0  ;;  %v2454_v43 = vmul.f32 0.1, %v2422_v15 }
 0x477   :  { %v2486_v49 = vadd.bf16 %v3016_v48, %v2478_v42  ;;  %v2479_v51 = vpack.c.bf16 %v2467_v47, %v2466_v44  ;;  %v2468_v52 = vsel %vm2436_vm8, %v2420_v14, %v2452_v45  ;;  %v2469_v53 = vsel %vm2437_vm10, %v2421_v19, %v2453_v46  ;;  %v3021_v14 = vld [vmem:[#allocation2 + $0x38] sm:$0xff]  }
 0x478   :  { %v2480_v7 = vpack.c.bf16 %v2469_v53, %v2468_v52  ;;  %v2455_v50 = vmul.f32 0.1, %v2423_v20  ;;  %v2470_v54 = vsel %vm2438_vm11, %v2422_v15, %v2454_v43  ;;  %vm2440_vm13 = vcmp.gt.f32.partialorder %v3592_v17, 0.0 }
 0x479   :  { %2894 = vmatprep.mubr.bf16.mxu1 %v2486_v49  ;;  %vm2441_vm14 = vcmp.gt.f32.partialorder %v2425_v21, 0.0  ;;  %v2456_v55 = vmul.f32 0.1, %v3592_v17  ;;  %v2457_v56 = vmul.f32 0.1, %v2425_v21  ;;  %vm2442_vm15 = vcmp.gt.f32.partialorder %v3594_v18, 0.0 }
 0x47a   :  { %v2471_v57 = vsel %vm2439_vm12, %v2423_v20, %v2455_v50  ;;  %vm2443_vm1 = vcmp.gt.f32.partialorder %v3596_v22, 0.0  ;;  %v2458_v61 = vmul.f32 0.1, %v3594_v18  ;;  %v2487_v63 = vadd.bf16 %v3017_v62, %v2479_v51 }
 0x47b   :  { %v2481_v58 = vpack.c.bf16 %v2471_v57, %v2470_v54  ;;  %v2472_v59 = vsel %vm2440_vm13, %v3592_v17, %v2456_v55  ;;  %v2473_v60 = vsel %vm2441_vm14, %v2425_v21, %v2457_v56  ;;  %v2459_v2 = vmul.f32 0.1, %v3596_v22  ;;  %v2753_v17 = vld [vmem:[%s3635_s7] ss:$0 sm:$0xff]  ;;  %s3173_s7 = smov [#allocation11]  }
 0x47c   :  { %v2482_v0 = vpack.c.bf16 %v2473_v60, %v2472_v59  ;;  %v2488_v5 = vadd.bf16 %v3018_v4, %v2480_v7  ;;  %v2474_v6 = vsel %vm2442_vm15, %v3594_v18, %v2458_v61  ;;  %s2697_s27 = sshll.u32 %s3173_s7, 4  ;;  %s2698_s27 = int_to_ptr.vmem [resolvable:$true] %s2697_s27 }
 0x47d   :  { %v2475_v8 = vsel %vm2443_vm1, %v3596_v22, %v2459_v2  ;;  %v2489_v11 = vadd.bf16 %v3019_v10, %v2481_v58  ;;  %s3132_s29 = scalar_lea.vmem %s2698_s27, 2048  ;;  %p3137_p13 = scmp.lt.s32.totalorder %s2698_s27, %s2698_s27 }
 0x47e   :  { %2895 = vmatmul.mubr.bf16.gmra.mrb[28].mxu1 %v2487_v63  ;;  %v2483_v9 = vpack.c.bf16 %v2475_v8, %v2474_v6  ;;  %v2490_v13 = vadd.bf16 %v3020_v12, %v2482_v0  ;;  %p3133_p12 = scmp.ne.s32.totalorder %s2698_s27, %s3132_s29  ;;  %p3138_p0 = scmp.lt.s32.totalorder %s3132_s29, %s3132_s29 }
 0x47f   :  { %2898 = vmatprep.mubr.bf16.mxu1 %v2488_v5 }
 0x480   :  { %v2491_v15 = vadd.bf16 %v3021_v14, %v2483_v9  ;;  %p3139_p1 = por %p3138_p0, %p3137_p13 }
 0x482   :  { %p3140_p2 = pnand %p3139_p1, %p3133_p12 }
 0x486   :  { %2899 = vmatmul.mubr.bf16.gmra.mrb[32].mxu1 %v2489_v11 }
 0x487   :  { %2902 = vmatprep.mubr.bf16.mxu1 %v2490_v13 }
 0x48e   :  { %2903 = vmatmul.mubr.bf16.gmra.mrb[36].mxu1 %v2491_v15 }
 0x549   :  { %v2892_v19 = vpop.f32.mrb[24].mxu1 }
 0x54a   :  { %v2606_v18 = vadd.f32 %v2892_v19, %v2753_v17  ;;  %v2597_v20 = vpop.f32.mrb[25].mxu1 }
 0x54b   :  { %v2598_v21 = vadd.f32 %v2753_v17, %v2597_v20  ;;  %v2893_v22 = vpop.f32.mrb[26].mxu1 }
 0x54c   :  { %2982 = vtanh.f32 %v2606_v18  ;;  %v2609_v24 = vadd.f32 %v2893_v22, %v2753_v17  ;;  %v2600_v23 = vpop.f32.mrb[27].mxu1 }
 0x54d   :  { %2984 = vtanh.f32 %v2598_v21  ;;  %v2601_v25 = vadd.f32 %v2753_v17, %v2600_v23 }
 0x54e   :  { %2986 = vtanh.f32 %v2609_v24 }
 0x54f   :  { %2988 = vtanh.f32 %v2601_v25 }
 0x551   :  { %v2896_v26 = vpop.f32.mrb[28].mxu1 }
 0x552   :  { %v2622_v27 = vadd.f32 %v2896_v26, %v2753_v17  ;;  %v2613_v28 = vpop.f32.mrb[29].mxu1 }
 0x553   :  { %v2614_v29 = vadd.f32 %v2753_v17, %v2613_v28  ;;  %v2897_v30 = vpop.f32.mrb[30].mxu1 }
 0x554   :  { %2990 = vtanh.f32 %v2622_v27  ;;  %v2625_v31 = vadd.f32 %v2897_v30, %v2753_v17  ;;  %v2616_v32 = vpop.f32.mrb[31].mxu1 }
 0x555   :  { %2992 = vtanh.f32 %v2614_v29  ;;  %v2617_v33 = vadd.f32 %v2753_v17, %v2616_v32 }
 0x556   :  { %v2983_v34 = vpop.eup %2982  ;;  %2994 = vtanh.f32 %v2625_v31 }
 0x557   :  { %v2985_v35 = vpop.eup %2984  ;;  %2678 = vst [vmem:[#allocation11 + $0x10] sm:$0xff] %v2983_v34  ;;  %2996 = vtanh.f32 %v2617_v33 }
 0x558   :  { %v2987_v1 = vpop.eup %2986  ;;  %2676 = vst [vmem:[#allocation11] sm:$0xff] %v2985_v35 }
 0x559   :  { %v2989_v16 = vpop.eup %2988  ;;  %2679 = vst [vmem:[#allocation11 + $0x18] sm:$0xff] %v2987_v1  ;;  %v2900_v3 = vpop.f32.mrb[32].mxu1 }
 0x55a   :  { %2677 = vst [vmem:[#allocation11 + $0x8] sm:$0xff] %v2989_v16  ;;  %v2638_v36 = vadd.f32 %v2900_v3, %v2753_v17  ;;  %v2629_v37 = vpop.f32.mrb[33].mxu1 }
 0x55b   :  { %v2630_v38 = vadd.f32 %v2753_v17, %v2629_v37  ;;  %v2901_v39 = vpop.f32.mrb[34].mxu1 }
 0x55c   :  { %2998 = vtanh.f32 %v2638_v36  ;;  %v2641_v40 = vadd.f32 %v2901_v39, %v2753_v17  ;;  %v2632_v41 = vpop.f32.mrb[35].mxu1 }
 0x55d   :  { %3000 = vtanh.f32 %v2630_v38  ;;  %v2633_v42 = vadd.f32 %v2753_v17, %v2632_v41 }
 0x55e   :  { %v2991_v44 = vpop.eup %2990  ;;  %3002 = vtanh.f32 %v2641_v40 }
 0x55f   :  { %v2993_v45 = vpop.eup %2992  ;;  %2682 = vst [vmem:[#allocation11 + $0x30] sm:$0xff] %v2991_v44  ;;  %3004 = vtanh.f32 %v2633_v42 }
 0x560   :  { %v2995_v46 = vpop.eup %2994  ;;  %2680 = vst [vmem:[#allocation11 + $0x20] sm:$0xff] %v2993_v45 }
 0x561   :  { %v2997_v47 = vpop.eup %2996  ;;  %2683 = vst [vmem:[#allocation11 + $0x38] sm:$0xff] %v2995_v46  ;;  %v2904_v43 = vpop.f32.mrb[36].mxu1 }
 0x562   :  { %2681 = vst [vmem:[#allocation11 + $0x28] sm:$0xff] %v2997_v47  ;;  %v2654_v48 = vadd.f32 %v2904_v43, %v2753_v17  ;;  %v2645_v49 = vpop.f32.mrb[37].mxu1 }
 0x563   :  { %v2646_v51 = vadd.f32 %v2753_v17, %v2645_v49  ;;  %v2905_v52 = vpop.f32.mrb[38].mxu1 }
 0x564   :  { %3006 = vtanh.f32 %v2654_v48  ;;  %v2657_v53 = vadd.f32 %v2905_v52, %v2753_v17  ;;  %v2648_v7 = vpop.f32.mrb[39].mxu1 }
 0x565   :  { %3008 = vtanh.f32 %v2646_v51  ;;  %v2649_v50 = vadd.f32 %v2753_v17, %v2648_v7 }
 0x566   :  { %v2999_v54 = vpop.eup %2998  ;;  %3010 = vtanh.f32 %v2657_v53 }
 0x567   :  { %v3001_v55 = vpop.eup %3000  ;;  %2686 = vst [vmem:[#allocation11 + $0x50] sm:$0xff] %v2999_v54  ;;  %3012 = vtanh.f32 %v2649_v50 }
 0x568   :  { %v3003_v56 = vpop.eup %3002  ;;  %2684 = vst [vmem:[#allocation11 + $0x40] sm:$0xff] %v3001_v55 }
 0x569   :  { %v3005_v57 = vpop.eup %3004  ;;  %2687 = vst [vmem:[#allocation11 + $0x58] sm:$0xff] %v3003_v56 }
 0x56a   :  { %2685 = vst [vmem:[#allocation11 + $0x48] sm:$0xff] %v3005_v57 }
 0x56e   :  { %v3007_v58 = vpop.eup %3006 }
 0x56f   :  { %v3009_v59 = vpop.eup %3008  ;;  %2690 = vst [vmem:[#allocation11 + $0x70] sm:$0xff] %v3007_v58 }
 0x570   :  { %v3011_v60 = vpop.eup %3010  ;;  %2688 = vst [vmem:[#allocation11 + $0x60] sm:$0xff] %v3009_v59 }
 0x571   :  { %v3013_v61 = vpop.eup %3012  ;;  %2691 = vst [vmem:[#allocation11 + $0x78] sm:$0xff] %v3011_v60 }
 0x572   :  { %2689 = vst [vmem:[#allocation11 + $0x68] sm:$0xff] %v3013_v61 }
 0x573   :  { %3143 = shalt.err (!%p3140_p2)
}
 0x574   :  { %s3144_s10 = scalar_lea.hbm %s3636_s8, 2048 }
 0x575   :  { %p3145_p3 = scmp.ne.s32.totalorder %s3636_s8, %s3144_s10  ;;  %p3148_p4 = scmp.lt.u32.totalorder %s3144_s10, %s3636_s8 }
 0x577   :  { %p3150_p5 = pnand %p3148_p4, %p3145_p3 }
 0x579   :  { %3153 = shalt.err (!%p3150_p5)
}
 0x57a   :  { %2703 = dma.vmem_to_hbm [thread:$0]  %s2698_s27, 2048, %s3636_s8, [#allocation4], %s3163_s15, %s3163_s15, %s3164_s16  }
 0x57b   :  { %3160 = dma.done.wait [#allocation4], 2048  }
 0x57c   :  { %3161 = vsyncadd [#allocation4], 4294965248 }
 0x57d   :  { %2707 = vsyncpa [#allocation3], 1 }
 0x57e   :  { %2708 = vsyncpa [#allocation6], 1 }
 0x57f   :  { %2709 = vsyncpa [#allocation9], 1 }
 0x580   :  { %2710 = vsyncpa [#allocation4], 1 }

</bundles_post_ra>
